<compile_context>
chip_gen: v6e
topology: v6e:2x2x1
jax: 0.10.0
libtpu: 0.0.40
codegen_flags: <defaults>
</compile_context>

<pallas_src>
import functools
import math

import jax
import jax.numpy as jnp
from jax import lax
from jax.experimental import pallas as pl
from jax.experimental.pallas import tpu as pltpu


def _convblock_kernel(x_ref, w1_ref, w2_ref, b1_ref, b2_ref, o_ref, h1_ref, p_ref):
    """Fused conv1+bn1+relu -> conv2+bn2+relu -> 2x2 maxpool on one row stripe.

    x_ref : (SH+4, W+2, Cin)     zero-padded input stripe (4-row halo, 1-col pad), bf16
    w1_ref: (9*Cin,  Cmid)       conv1 weights, BN1 scale folded, bf16
    w2_ref: (9*Cmid, Cout)       conv2 weights, BN2 scale folded, bf16
    b1_ref/b2_ref: (1, C)        folded BN bias (zero with init_bn stats), f32
    o_ref : (SH//2 * W//2, Cout) pooled output rows in (row, col)-major order, f32
    h1_ref: (SH+2, W+2, Cmid)    VMEM scratch: conv1 activation + conv2 zero padding
    p_ref : (SH//2 * W, Cout)    VMEM scratch for the column-pair max
    """
    SHp4, Wp, Cin = x_ref.shape
    SH, W = SHp4 - 4, Wp - 2
    Cmid = w1_ref.shape[1]
    Cout = w2_ref.shape[1]
    Ho, Wo = SH // 2, W // 2

    # ---- conv1 (+ folded BN1) + ReLU on SH+2 rows (1-row halo each side for conv2)
    x = x_ref[...].astype(jnp.float32)                       # (SH+4, W+2, Cin)
    m1 = (SH + 2) * W
    taps1 = jnp.concatenate(
        [x[kh:kh + SH + 2, kw:kw + W, :].reshape(m1, Cin)
         for kh in range(3) for kw in range(3)], axis=-1)    # (m1, 9*Cin)
    a1 = jnp.dot(taps1.astype(w1_ref.dtype), w1_ref[...],
                 preferred_element_type=jnp.float32)         # single MXU matmul, K=9*Cin
    a1 = jnp.maximum(a1 + b1_ref[...], 0.0)                  # (m1, Cmid) f32

    # Stage conv1 activation in VMEM with zeroed W-padding columns (conv2 'same' pad).
    h1_ref[...] = jnp.zeros(h1_ref.shape, h1_ref.dtype)
    h1_ref[:, 1:W + 1, :] = a1.reshape(SH + 2, W, Cmid)

    # Halo rows outside the image must be conv2's zero padding, not
    # "conv1 evaluated on the padded input".
    @pl.when(pl.program_id(1) == 0)
    def _():
        h1_ref[0:1, :, :] = jnp.zeros((1, Wp, Cmid), h1_ref.dtype)

    @pl.when(pl.program_id(1) == pl.num_programs(1) - 1)
    def _():
        h1_ref[SH + 1:SH + 2, :, :] = jnp.zeros((1, Wp, Cmid), h1_ref.dtype)

    # ---- conv2 (+ folded BN2) + ReLU
    h1 = h1_ref[...]                                         # (SH+2, W+2, Cmid) f32
    m2 = SH * W
    taps2 = jnp.concatenate(
        [h1[kh:kh + SH, kw:kw + W, :].reshape(m2, Cmid)
         for kh in range(3) for kw in range(3)], axis=-1)    # (m2, 9*Cmid)
    a2 = jnp.dot(taps2.astype(w2_ref.dtype), w2_ref[...],
                 preferred_element_type=jnp.float32)         # single MXU matmul, K=9*Cmid
    a2 = jnp.maximum(a2 + b2_ref[...], 0.0)                  # (m2, Cout) f32

    # ---- fused 2x2 max pool (rows via leading-dim reshape, cols via strided reads)
    r = a2.reshape(Ho, 2, W, Cout)                           # flat row -> (h//2, h%2, w)
    p_ref[...] = jnp.maximum(r[:, 0], r[:, 1]).reshape(Ho * W, Cout)
    npo = Ho * Wo
    o_ref[...] = jnp.maximum(p_ref[pl.ds(0, npo, 2), :],     # even columns
                             p_ref[pl.ds(1, npo, 2), :])     # odd columns


def _pick_stripe_rows(H, target_rows):
    """Largest even divisor of H that is <= target_rows (H must be even)."""
    best = 2
    for d in range(2, H + 1, 2):
        if H % d == 0 and d <= target_rows:
            best = d
    return best


@functools.partial(jax.jit, static_argnames=("max_stripe_rows",))
def conv_block_forward(x_nchw, w1, w2, b1, b2, *, max_stripe_rows=8):
    """NCHW in / NCHW out forward pass of ConvBlock (default max-pool path)."""
    N, Cin, H, W = x_nchw.shape
    if H % 2 or W % 2:
        # TODO(synk): odd spatial sizes (PyTorch floor-pools the trailing row/col).
        raise NotImplementedError("H and W must be even for the 2x2 max pool")
    Cmid = w1.shape[1]
    Cout = w2.shape[1]

    # Stripe height: size the per-step working set against VMEM (re-derive for
    # v7x's 64 MiB); SH is even, so 2x2 pool windows never straddle a stripe.
    SH = _pick_stripe_rows(H, max_stripe_rows)
    S = H // SH
    Ho_t, Wo = SH // 2, W // 2

    # NCHW -> NHWC, bf16 HBM stream; zero 'same' padding: 2 rows top/bottom
    # (conv1 pad + conv2 halo), 1 column left/right (conv1 pad).
    x = jnp.transpose(x_nchw, (0, 2, 3, 1)).astype(jnp.bfloat16)
    xp = jnp.pad(x, ((0, 0), (2, 2), (1, 1), (0, 0)))              # (N, H+4, W+2, Cin)
    # Halo'd row stripes: only 4 duplicated rows per stripe (vs the old 9x im2col).
    stripes = jnp.stack([xp[:, s * SH:s * SH + SH + 4] for s in range(S)], axis=1)

    out = pl.pallas_call(
        _convblock_kernel,
        grid=(N, S),
        in_specs=[
            pl.BlockSpec((None, None, SH + 4, W + 2, Cin),
                         lambda n, s: (n, s, 0, 0, 0)),
            # weights / biases: one small block, resident across all grid steps
            pl.BlockSpec((9 * Cin, Cmid), lambda n, s: (0, 0)),
            pl.BlockSpec((9 * Cmid, Cout), lambda n, s: (0, 0)),
            pl.BlockSpec((1, Cmid), lambda n, s: (0, 0)),
            pl.BlockSpec((1, Cout), lambda n, s: (0, 0)),
        ],
        out_specs=pl.BlockSpec((None, None, Ho_t * Wo, Cout),
                               lambda n, s: (n, s, 0, 0)),
        out_shape=jax.ShapeDtypeStruct((N, S, Ho_t * Wo, Cout), jnp.float32),
        scratch_shapes=[
            pltpu.VMEM((SH + 2, W + 2, Cmid), jnp.float32),   # conv1 activation + pad
            pltpu.VMEM((Ho_t * W, Cout), jnp.float32),        # row-pooled conv2 output
        ],
        compiler_params=pltpu.CompilerParams(
            dimension_semantics=("parallel", "parallel"),
            vmem_limit_bytes=32 * 1024 * 1024),
    )(stripes, w1, w2, b1, b2)

    y = out.reshape(N, S * Ho_t, Wo, Cout)                    # (N, H//2, W//2, Cout)
    return jnp.transpose(y, (0, 3, 1, 2))                     # NHWC -> NCHW


class ConvBlockPallas:
    """Pallas port of ConvBlock(in_channels, out_channels, ks=3, strd=1)."""

    def __init__(self, in_channels, out_channels, key, eps=1e-5):
        k1, k2 = jax.random.split(key)
        # kaiming_uniform_ (nonlinearity='leaky_relu', a=0): bound = sqrt(6 / fan_in)
        bound1 = math.sqrt(6.0 / (in_channels * 9))
        bound2 = math.sqrt(6.0 / (out_channels * 9))
        w1 = jax.random.uniform(k1, (3, 3, in_channels, out_channels),
                                jnp.float32, -bound1, bound1)
        w2 = jax.random.uniform(k2, (3, 3, out_channels, out_channels),
                                jnp.float32, -bound2, bound2)
        # Inference-mode BN fold with init_bn stats (gamma=1, beta=0, mean=0, var=1):
        # scale = 1/sqrt(var+eps) folded into the conv weights, bias = 0 kept as input.
        scale = 1.0 / math.sqrt(1.0 + eps)
        # taps layout: w[(kh*3+kw)*Cin + ci, co] == torch_weight[co, ci, kh, kw]
        self.w1 = (w1 * scale).reshape(9 * in_channels, out_channels).astype(jnp.bfloat16)
        self.w2 = (w2 * scale).reshape(9 * out_channels, out_channels).astype(jnp.bfloat16)
        self.b1 = jnp.zeros((1, out_channels), jnp.float32)
        self.b2 = jnp.zeros((1, out_channels), jnp.float32)

    def __call__(self, x_nchw, pool_size=(2, 2), pool_type='max'):
        if pool_type != 'max' or tuple(pool_size) != (2, 2):
            # TODO(synk): pool_type='avg' and other pool sizes are not implemented.
            raise NotImplementedError("only pool_type='max', pool_size=(2, 2)")
        return conv_block_forward(x_nchw, self.w1, self.w2, self.b1, self.b2)


def _reference_forward(x_nchw, w1_flat, w2_flat):
    """Pure-XLA reference with the same bf16 quantization points as the kernel."""
    Cin = x_nchw.shape[1]
    Cmid = w1_flat.shape[1]
    Cout = w2_flat.shape[1]
    w1 = w1_flat.astype(jnp.float32).reshape(3, 3, Cin, Cmid)
    w2 = w2_flat.astype(jnp.float32).reshape(3, 3, Cmid, Cout)
    x = jnp.transpose(x_nchw, (0, 2, 3, 1)).astype(jnp.bfloat16).astype(jnp.float32)
    dn1 = lax.conv_dimension_numbers(x.shape, w1.shape, ('NHWC', 'HWIO', 'NHWC'))
    y = jnp.maximum(lax.conv_general_dilated(x, w1, (1, 1), ((1, 1), (1, 1)),
                                             dimension_numbers=dn1), 0.0)
    y = y.astype(jnp.bfloat16).astype(jnp.float32)
    dn2 = lax.conv_dimension_numbers(y.shape, w2.shape, ('NHWC', 'HWIO', 'NHWC'))
    z = jnp.maximum(lax.conv_general_dilated(y, w2, (1, 1), ((1, 1), (1, 1)),
                                             dimension_numbers=dn2), 0.0)
    N, H, W, _ = z.shape
    z = z.reshape(N, H // 2, 2, W // 2, 2, Cout).max(axis=(2, 4))
    return jnp.transpose(z, (0, 3, 1, 2))


if __name__ == "__main__":
    key = jax.random.PRNGKey(0)
    kparam, kx = jax.random.split(key)

    in_channels, out_channels = 4, 8
    block = ConvBlockPallas(in_channels, out_channels, kparam)

    x = jax.random.normal(kx, (2, in_channels, 16, 16), jnp.float32)  # NCHW
    y = block(x)
    jax.block_until_ready(y)

    assert y.shape == (2, out_channels, 8, 8), y.shape
    assert bool(jnp.all(jnp.isfinite(y)))

    # sanity check against a pure-XLA reference of the same forward pass
    y_ref = _reference_forward(x, block.w1, block.w2)
    assert bool(jnp.allclose(y, y_ref, rtol=2e-2, atol=2e-2)), \
        float(jnp.max(jnp.abs(y - y_ref)))

    print("KERNEL_OK")
</pallas_src>

<mosaic_0001>
module attributes {stable_mosaic.version = 11 : i64} {
  func.func @_convblock_kernel(%arg0: i32, %arg1: i32, %arg2: memref<1x1x12x18x4xbf16, #tpu.memory_space<vmem>>, %arg3: memref<36x8xbf16, #tpu.memory_space<vmem>>, %arg4: memref<72x8xbf16, #tpu.memory_space<vmem>>, %arg5: memref<1x8xf32, #tpu.memory_space<vmem>>, %arg6: memref<1x8xf32, #tpu.memory_space<vmem>>, %arg7: memref<1x1x32x8xf32, #tpu.memory_space<vmem>>, %arg8: memref<10x18x8xf32, #tpu.memory_space<vmem>>, %arg9: memref<64x8xf32, #tpu.memory_space<vmem>>) attributes {dimension_semantics = [#tpu.dimension_semantics<parallel>, #tpu.dimension_semantics<parallel>], iteration_bounds = array<i64: 2, 2>, scalar_prefetch = 0 : i64, scratch_operands = 2 : i64, tpu.core_type = #tpu.core_type<tc>, window_params = [{transform_indices = @transform_0, window_bounds = array<i64: 1, 1, 12, 18, 4>}, {pipeline_mode = #tpu.pipeline_mode<synchronous>, transform_indices = @transform_1, window_bounds = array<i64: 36, 8>}, {pipeline_mode = #tpu.pipeline_mode<synchronous>, transform_indices = @transform_2, window_bounds = array<i64: 72, 8>}, {pipeline_mode = #tpu.pipeline_mode<synchronous>, transform_indices = @transform_3, window_bounds = array<i64: 1, 8>}, {pipeline_mode = #tpu.pipeline_mode<synchronous>, transform_indices = @transform_4, window_bounds = array<i64: 1, 8>}, {transform_indices = @transform_5, window_bounds = array<i64: 1, 1, 32, 8>}]} {
    %c0 = arith.constant 0 : index
    %c0_0 = arith.constant 0 : index
    %c0_1 = arith.constant 0 : index
    %c0_2 = arith.constant 0 : index
    %c0_3 = arith.constant 0 : index
    %0 = vector.load %arg2[%c0, %c0_0, %c0_1, %c0_2, %c0_3] : memref<1x1x12x18x4xbf16, #tpu.memory_space<vmem>>, vector<1x1x12x18x4xbf16>
    %1 = vector.shape_cast %0 : vector<1x1x12x18x4xbf16> to vector<12x18x4xbf16>
    %2 = arith.extf %1 : vector<12x18x4xbf16> to vector<12x18x4xf32>
    %3 = vector.extract_strided_slice %2 {offsets = [0, 0, 0], sizes = [10, 16, 4], strides = [1, 1, 1]} : vector<12x18x4xf32> to vector<10x16x4xf32>
    %4 = vector.shape_cast %3 : vector<10x16x4xf32> to vector<160x4xf32>
    %5 = vector.extract_strided_slice %2 {offsets = [0, 1, 0], sizes = [10, 16, 4], strides = [1, 1, 1]} : vector<12x18x4xf32> to vector<10x16x4xf32>
    %6 = vector.shape_cast %5 : vector<10x16x4xf32> to vector<160x4xf32>
    %7 = vector.extract_strided_slice %2 {offsets = [0, 2, 0], sizes = [10, 16, 4], strides = [1, 1, 1]} : vector<12x18x4xf32> to vector<10x16x4xf32>
    %8 = vector.shape_cast %7 : vector<10x16x4xf32> to vector<160x4xf32>
    %9 = vector.extract_strided_slice %2 {offsets = [1, 0, 0], sizes = [10, 16, 4], strides = [1, 1, 1]} : vector<12x18x4xf32> to vector<10x16x4xf32>
    %10 = vector.shape_cast %9 : vector<10x16x4xf32> to vector<160x4xf32>
    %11 = vector.extract_strided_slice %2 {offsets = [1, 1, 0], sizes = [10, 16, 4], strides = [1, 1, 1]} : vector<12x18x4xf32> to vector<10x16x4xf32>
    %12 = vector.shape_cast %11 : vector<10x16x4xf32> to vector<160x4xf32>
    %13 = vector.extract_strided_slice %2 {offsets = [1, 2, 0], sizes = [10, 16, 4], strides = [1, 1, 1]} : vector<12x18x4xf32> to vector<10x16x4xf32>
    %14 = vector.shape_cast %13 : vector<10x16x4xf32> to vector<160x4xf32>
    %15 = vector.extract_strided_slice %2 {offsets = [2, 0, 0], sizes = [10, 16, 4], strides = [1, 1, 1]} : vector<12x18x4xf32> to vector<10x16x4xf32>
    %16 = vector.shape_cast %15 : vector<10x16x4xf32> to vector<160x4xf32>
    %17 = vector.extract_strided_slice %2 {offsets = [2, 1, 0], sizes = [10, 16, 4], strides = [1, 1, 1]} : vector<12x18x4xf32> to vector<10x16x4xf32>
    %18 = vector.shape_cast %17 : vector<10x16x4xf32> to vector<160x4xf32>
    %19 = vector.extract_strided_slice %2 {offsets = [2, 2, 0], sizes = [10, 16, 4], strides = [1, 1, 1]} : vector<12x18x4xf32> to vector<10x16x4xf32>
    %20 = vector.shape_cast %19 : vector<10x16x4xf32> to vector<160x4xf32>
    %21 = tpu.concatenate %4, %6, %8, %10, %12, %14, %16, %18, %20 in 1 : vector<160x4xf32>, vector<160x4xf32>, vector<160x4xf32>, vector<160x4xf32>, vector<160x4xf32>, vector<160x4xf32>, vector<160x4xf32>, vector<160x4xf32>, vector<160x4xf32> -> vector<160x36xf32>
    %22 = arith.truncf %21 : vector<160x36xf32> to vector<160x36xbf16>
    %c0_4 = arith.constant 0 : index
    %c0_5 = arith.constant 0 : index
    %23 = vector.load %arg3[%c0_4, %c0_5] : memref<36x8xbf16, #tpu.memory_space<vmem>>, vector<36x8xbf16>
    %cst = arith.constant dense<0.000000e+00> : vector<160x8xf32>
    %24 = tpu.matmul %22, %23, %cst {dimension_numbers = #tpu.dot_dimension_numbers<[1], [0], [0], [1], [0, 0, 1, 1], [], []>} : vector<160x36xbf16>, vector<36x8xbf16>, vector<160x8xf32> -> vector<160x8xf32>
    %c0_6 = arith.constant 0 : index
    %c0_7 = arith.constant 0 : index
    %25 = vector.load %arg5[%c0_6, %c0_7] : memref<1x8xf32, #tpu.memory_space<vmem>>, vector<1x8xf32>
    %26 = vector.broadcast %25 : vector<1x8xf32> to vector<160x8xf32>
    %27 = arith.addf %24, %26 : vector<160x8xf32>
    %cst_8 = arith.constant 0.000000e+00 : f32
    %28 = vector.broadcast %cst_8 : f32 to vector<160x8xf32>
    %29 = arith.maximumf %27, %28 : vector<160x8xf32>
    %cst_9 = arith.constant 0.000000e+00 : f32
    %30 = vector.broadcast %cst_9 : f32 to vector<10x18x8xf32>
    %c0_10 = arith.constant 0 : index
    %c0_11 = arith.constant 0 : index
    %c0_12 = arith.constant 0 : index
    %31 = vector.load %arg8[%c0_10, %c0_11, %c0_12] : memref<10x18x8xf32, #tpu.memory_space<vmem>>, vector<10x18x8xf32>
    tpu.vector_store %arg8[%c0_10, %c0_11, %c0_12], %30 {strides = array<i32>} : memref<10x18x8xf32, #tpu.memory_space<vmem>>, vector<10x18x8xf32>,
    %32 = vector.shape_cast %29 : vector<160x8xf32> to vector<10x16x8xf32>
    %c0_13 = arith.constant 0 : index
    %c1 = arith.constant 1 : index
    %c0_14 = arith.constant 0 : index
    %33 = vector.load %arg8[%c0_13, %c1, %c0_14] : memref<10x18x8xf32, #tpu.memory_space<vmem>>, vector<10x16x8xf32>
    tpu.vector_store %arg8[%c0_13, %c1, %c0_14], %32 {strides = array<i32>} : memref<10x18x8xf32, #tpu.memory_space<vmem>>, vector<10x16x8xf32>,
    %c0_i32 = arith.constant 0 : i32
    %34 = arith.cmpi eq, %arg1, %c0_i32 : i32
    %35 = arith.extui %34 : i1 to i32
    %c0_i32_15 = arith.constant 0 : i32
    %36 = arith.cmpi ne, %35, %c0_i32_15 : i32
    scf.if %36 {
      %cst_36 = arith.constant 0.000000e+00 : f32
      %82 = vector.broadcast %cst_36 : f32 to vector<1x18x8xf32>
      %c0_37 = arith.constant 0 : index
      %c0_38 = arith.constant 0 : index
      %c0_39 = arith.constant 0 : index
      %83 = vector.load %arg8[%c0_37, %c0_38, %c0_39] : memref<10x18x8xf32, #tpu.memory_space<vmem>>, vector<1x18x8xf32>
      tpu.vector_store %arg8[%c0_37, %c0_38, %c0_39], %82 {strides = array<i32>} : memref<10x18x8xf32, #tpu.memory_space<vmem>>, vector<1x18x8xf32>,
    } else {
    }
    %c1_i32 = arith.constant 1 : i32
    %37 = arith.cmpi eq, %arg1, %c1_i32 : i32
    %38 = arith.extui %37 : i1 to i32
    %c0_i32_16 = arith.constant 0 : i32
    %39 = arith.cmpi ne, %38, %c0_i32_16 : i32
    scf.if %39 {
      %cst_36 = arith.constant 0.000000e+00 : f32
      %82 = vector.broadcast %cst_36 : f32 to vector<1x18x8xf32>
      %c9 = arith.constant 9 : index
      %c0_37 = arith.constant 0 : index
      %c0_38 = arith.constant 0 : index
      %83 = vector.load %arg8[%c9, %c0_37, %c0_38] : memref<10x18x8xf32, #tpu.memory_space<vmem>>, vector<1x18x8xf32>
      tpu.vector_store %arg8[%c9, %c0_37, %c0_38], %82 {strides = array<i32>} : memref<10x18x8xf32, #tpu.memory_space<vmem>>, vector<1x18x8xf32>,
    } else {
    }
    %c0_17 = arith.constant 0 : index
    %c0_18 = arith.constant 0 : index
    %c0_19 = arith.constant 0 : index
    %40 = vector.load %arg8[%c0_17, %c0_18, %c0_19] : memref<10x18x8xf32, #tpu.memory_space<vmem>>, vector<10x18x8xf32>
    %41 = vector.extract_strided_slice %40 {offsets = [0, 0, 0], sizes = [8, 16, 8], strides = [1, 1, 1]} : vector<10x18x8xf32> to vector<8x16x8xf32>
    %42 = vector.shape_cast %41 : vector<8x16x8xf32> to vector<128x8xf32>
    %43 = vector.extract_strided_slice %40 {offsets = [0, 1, 0], sizes = [8, 16, 8], strides = [1, 1, 1]} : vector<10x18x8xf32> to vector<8x16x8xf32>
    %44 = vector.shape_cast %43 : vector<8x16x8xf32> to vector<128x8xf32>
    %45 = vector.extract_strided_slice %40 {offsets = [0, 2, 0], sizes = [8, 16, 8], strides = [1, 1, 1]} : vector<10x18x8xf32> to vector<8x16x8xf32>
    %46 = vector.shape_cast %45 : vector<8x16x8xf32> to vector<128x8xf32>
    %47 = vector.extract_strided_slice %40 {offsets = [1, 0, 0], sizes = [8, 16, 8], strides = [1, 1, 1]} : vector<10x18x8xf32> to vector<8x16x8xf32>
    %48 = vector.shape_cast %47 : vector<8x16x8xf32> to vector<128x8xf32>
    %49 = vector.extract_strided_slice %40 {offsets = [1, 1, 0], sizes = [8, 16, 8], strides = [1, 1, 1]} : vector<10x18x8xf32> to vector<8x16x8xf32>
    %50 = vector.shape_cast %49 : vector<8x16x8xf32> to vector<128x8xf32>
    %51 = vector.extract_strided_slice %40 {offsets = [1, 2, 0], sizes = [8, 16, 8], strides = [1, 1, 1]} : vector<10x18x8xf32> to vector<8x16x8xf32>
    %52 = vector.shape_cast %51 : vector<8x16x8xf32> to vector<128x8xf32>
    %53 = vector.extract_strided_slice %40 {offsets = [2, 0, 0], sizes = [8, 16, 8], strides = [1, 1, 1]} : vector<10x18x8xf32> to vector<8x16x8xf32>
    %54 = vector.shape_cast %53 : vector<8x16x8xf32> to vector<128x8xf32>
    %55 = vector.extract_strided_slice %40 {offsets = [2, 1, 0], sizes = [8, 16, 8], strides = [1, 1, 1]} : vector<10x18x8xf32> to vector<8x16x8xf32>
    %56 = vector.shape_cast %55 : vector<8x16x8xf32> to vector<128x8xf32>
    %57 = vector.extract_strided_slice %40 {offsets = [2, 2, 0], sizes = [8, 16, 8], strides = [1, 1, 1]} : vector<10x18x8xf32> to vector<8x16x8xf32>
    %58 = vector.shape_cast %57 : vector<8x16x8xf32> to vector<128x8xf32>
    %59 = tpu.concatenate %42, %44, %46, %48, %50, %52, %54, %56, %58 in 1 : vector<128x8xf32>, vector<128x8xf32>, vector<128x8xf32>, vector<128x8xf32>, vector<128x8xf32>, vector<128x8xf32>, vector<128x8xf32>, vector<128x8xf32>, vector<128x8xf32> -> vector<128x72xf32>
    %60 = arith.truncf %59 : vector<128x72xf32> to vector<128x72xbf16>
    %c0_20 = arith.constant 0 : index
    %c0_21 = arith.constant 0 : index
    %61 = vector.load %arg4[%c0_20, %c0_21] : memref<72x8xbf16, #tpu.memory_space<vmem>>, vector<72x8xbf16>
    %cst_22 = arith.constant dense<0.000000e+00> : vector<128x8xf32>
    %62 = tpu.matmul %60, %61, %cst_22 {dimension_numbers = #tpu.dot_dimension_numbers<[1], [0], [0], [1], [0, 0, 1, 1], [], []>} : vector<128x72xbf16>, vector<72x8xbf16>, vector<128x8xf32> -> vector<128x8xf32>
    %c0_23 = arith.constant 0 : index
    %c0_24 = arith.constant 0 : index
    %63 = vector.load %arg6[%c0_23, %c0_24] : memref<1x8xf32, #tpu.memory_space<vmem>>, vector<1x8xf32>
    %64 = vector.broadcast %63 : vector<1x8xf32> to vector<128x8xf32>
    %65 = arith.addf %62, %64 : vector<128x8xf32>
    %cst_25 = arith.constant 0.000000e+00 : f32
    %66 = vector.broadcast %cst_25 : f32 to vector<128x8xf32>
    %67 = arith.maximumf %65, %66 : vector<128x8xf32>
    %68 = vector.shape_cast %67 : vector<128x8xf32> to vector<4x2x16x8xf32>
    %69 = vector.extract_strided_slice %68 {offsets = [0, 0, 0, 0], sizes = [4, 1, 16, 8], strides = [1, 1, 1, 1]} : vector<4x2x16x8xf32> to vector<4x1x16x8xf32>
    %70 = vector.shape_cast %69 : vector<4x1x16x8xf32> to vector<4x16x8xf32>
    %71 = vector.extract_strided_slice %68 {offsets = [0, 1, 0, 0], sizes = [4, 1, 16, 8], strides = [1, 1, 1, 1]} : vector<4x2x16x8xf32> to vector<4x1x16x8xf32>
    %72 = vector.shape_cast %71 : vector<4x1x16x8xf32> to vector<4x16x8xf32>
    %73 = arith.maximumf %70, %72 : vector<4x16x8xf32>
    %74 = vector.shape_cast %73 : vector<4x16x8xf32> to vector<64x8xf32>
    %c0_26 = arith.constant 0 : index
    %c0_27 = arith.constant 0 : index
    %75 = vector.load %arg9[%c0_26, %c0_27] : memref<64x8xf32, #tpu.memory_space<vmem>>, vector<64x8xf32>
    tpu.vector_store %arg9[%c0_26, %c0_27], %74 {strides = array<i32>} : memref<64x8xf32, #tpu.memory_space<vmem>>, vector<64x8xf32>,
    %c0_28 = arith.constant 0 : index
    %c0_29 = arith.constant 0 : index
    %76 = tpu.strided_load %arg9[%c0_28, %c0_29] {strides = array<i32: 2, 1>} : memref<64x8xf32, #tpu.memory_space<vmem>>, vector<32x8xf32>
    %c1_30 = arith.constant 1 : index
    %c0_31 = arith.constant 0 : index
    %77 = tpu.strided_load %arg9[%c1_30, %c0_31] {strides = array<i32: 2, 1>} : memref<64x8xf32, #tpu.memory_space<vmem>>, vector<32x8xf32>
    %78 = arith.maximumf %76, %77 : vector<32x8xf32>
    %c0_32 = arith.constant 0 : index
    %c0_33 = arith.constant 0 : index
    %c0_34 = arith.constant 0 : index
    %c0_35 = arith.constant 0 : index
    %79 = vector.load %arg7[%c0_32, %c0_33, %c0_34, %c0_35] : memref<1x1x32x8xf32, #tpu.memory_space<vmem>>, vector<1x1x32x8xf32>
    %80 = vector.shape_cast %79 : vector<1x1x32x8xf32> to vector<32x8xf32>
    %81 = vector.shape_cast %78 : vector<32x8xf32> to vector<1x1x32x8xf32>
    tpu.vector_store %arg7[%c0_32, %c0_33, %c0_34, %c0_35], %81 {strides = array<i32>} : memref<1x1x32x8xf32, #tpu.memory_space<vmem>>, vector<1x1x32x8xf32>,
    return
  }
  func.func @transform_0(%arg0: i32, %arg1: i32) -> (i32, i32, i32, i32, i32) {
    %c0_i32 = arith.constant 0 : i32
    %c0_i32_0 = arith.constant 0 : i32
    %c0_i32_1 = arith.constant 0 : i32
    %c0_i32_2 = arith.constant 0 : i32
    return %arg0, %arg1, %c0_i32, %c0_i32_0, %c0_i32_1 : i32, i32, i32, i32, i32
  }
  func.func @transform_1(%arg0: i32, %arg1: i32) -> (i32, i32) {
    %c0_i32 = arith.constant 0 : i32
    %c0_i32_0 = arith.constant 0 : i32
    %c0_i32_1 = arith.constant 0 : i32
    return %c0_i32, %c0_i32_0 : i32, i32
  }
  func.func @transform_2(%arg0: i32, %arg1: i32) -> (i32, i32) {
    %c0_i32 = arith.constant 0 : i32
    %c0_i32_0 = arith.constant 0 : i32
    %c0_i32_1 = arith.constant 0 : i32
    return %c0_i32, %c0_i32_0 : i32, i32
  }
  func.func @transform_3(%arg0: i32, %arg1: i32) -> (i32, i32) {
    %c0_i32 = arith.constant 0 : i32
    %c0_i32_0 = arith.constant 0 : i32
    %c0_i32_1 = arith.constant 0 : i32
    return %c0_i32, %c0_i32_0 : i32, i32
  }
  func.func @transform_4(%arg0: i32, %arg1: i32) -> (i32, i32) {
    %c0_i32 = arith.constant 0 : i32
    %c0_i32_0 = arith.constant 0 : i32
    %c0_i32_1 = arith.constant 0 : i32
    return %c0_i32, %c0_i32_0 : i32, i32
  }
  func.func @transform_5(%arg0: i32, %arg1: i32) -> (i32, i32, i32, i32) {
    %c0_i32 = arith.constant 0 : i32
    %c0_i32_0 = arith.constant 0 : i32
    %c0_i32_1 = arith.constant 0 : i32
    return %arg0, %arg1, %c0_i32, %c0_i32_0 : i32, i32, i32, i32
  }
}

</mosaic_0001>

<bundles_post_ra>
// kernel: conv_block_forward.1
= control target key start
LH: loop header
LB: loop body
LE: loop exit
PB: predicated region body
PF: predicated region fallthrough
CT: control target
= control target key end

     0   :  { %s3434_s18 = smov 0   ;;  %s3436_s19 = smov 0   ;;  %s4651_s0 = inlined_call_operand.vmem [shape: bf16[2,2,12,18,4], index: 0, kind: input, shape index: {}]   ;;  %s4652_s1 = inlined_call_operand.vmem [shape: bf16[36,8], index: 1, kind: input, shape index: {}]   ;;  %s4653_s2 = inlined_call_operand.vmem [shape: bf16[72,8], index: 2, kind: input, shape index: {}]   ;;  %s4654_s3 = inlined_call_operand.vmem [shape: f32[1,8], index: 3, kind: input, shape index: {}]   ;;  %s4655_s4 = inlined_call_operand.vmem [shape: f32[1,8], index: 4, kind: input, shape index: {}]   ;;  %s4656_s5 = inlined_call_operand.vmem [shape: f32[2,2,32,8], index: 5, kind: output, shape index: {}]  }
   0x1   :  { %s3438_s20 = smov 0   ;;  %s3440_s21 = smov 0  }
   0x2   :  { %s3442_s22 = smov 0  }
   0x3 LB: > { %s24_s23 = sadd.s32 1, %s3379_s20  ;;  %s27_s24 = sadd.s32 1, %s3383_s21  ;;  %s3387_s22 = sphi %s3442_s22, %s15_s22   ;;  %s3383_s21 = sphi %s3440_s21, %s4660_s21   ;;  %s3379_s20 = sphi %s3438_s20, %s4659_s20   ;;  %s3375_s19 = sphi %s3436_s19, %s4658_s19   ;;  %s3371_s18 = sphi %s3434_s18, %s4657_s18  }
   0x4   : > { %p25_p0 = scmp.ge.s32.totalorder %s24_s23, 2  ;;  %p2418_p1 = scmp.ge.s32.totalorder %s3387_s22, 1 }
   0x5   : > { %p207_p2 = scmp.lt.s32.totalorder %s3387_s22, 5 }
   0x6   : > { %s4662_s23 = smov (%p25_p0, %s24_s23), 0  ;;  %s4664_s24 = smov (!%p25_p0, %s27_s24), %s3383_s21 }
   0x7   : > { %p208_p3 = pnand %p2418_p1, %p207_p2  ;;  %p29_p4 = scmp.ge.s32.totalorder %s4664_s24, 2 }
   0x8   : > { %p243_p5 = scmp.lt.s32.totalorder (!%p208_p3), %s3375_s19, 1  ;;  %p245_p6 = scmp.lt.s32.totalorder (!%p208_p3), %s3371_s18, 1 }
   0x9   : > { %s4666_s24 = smov (%p29_p4, %s4664_s24), 0  ;;  %211 = sbr.rel (%p208_p3) target bundleno = 993 (0x3e1), region = 40 }
   0xa   : > { %s3389_s15 = smov (!%p208_p3), 12   ;;  %s3390_s16 = smov (!%p208_p3), 4  }
   0xb   : > { %s3391_s17 = smov (!%p208_p3), 8   ;;  %p2437_p7 = scmp.ne.s32.totalorder (!%p208_p3), %s3371_s18, 0 }
   0xe   : > { %s4668_s19 = smov (!%p243_p5, %s3375_s19), 1  ;;  %vm364_vm0 = vcmask 1046528   ;;  %vm415_vm1 = vcmask 1045504   ;;  %vm1208_vm2 = vcmask 1041408   ;;  %vm972_vm3 = vcmask 31744  }
   0xf   : > { %s246_s25 = scalar_select %p245_p6, %s3371_s18, 1  ;;  %vm993_vm4 = vcmask 64512   ;;  %vm1014_vm5 = vcmask 97280   ;;  %vm1035_vm6 = vcmask 130048   ;;  %vm1056_vm7 = vcmask 162816  }
  0x10   : > { %s2565_s26 = smul.u32 72, %s4668_s19  ;;  %s2421_s27 = sshll.u32 %s4668_s19, 3  ;;  %vm1077_vm8 = vcmask 195584   ;;  %vm1098_vm9 = vcmask 228352   ;;  %vm1119_vm10 = vcmask 261120   ;;  %vm1177_vm11 = vcmask 293888  }
  0x11   : > { %s2564_s28 = smul.u32 36, %s246_s25  ;;  %s2420_s29 = sshll.u32 %s246_s25, 2  ;;  %vm1347_vm12 = vcmask 58368  }
  0x12   : > { %s258_s30 = sadd.s32 %s2421_s27, %s2420_s29  ;;  %s3392_s19 = smov 16  }
  0x13   : > { %s249_s6 = sadd.s32 %s2565_s26, %s2564_s28  ;;  %s2422_s7 = sshll.u32 %s258_s30, 3 }
  0x14   : > { %s2419_s8 = sshll.u32 %s249_s6, 2  ;;  %s3471_s11 = scalar_lea.vmem %s4656_s5, %s2422_s7 }
  0x15   : > { %s3476_s14 = scalar_lea.vmem %s4651_s0, %s2419_s8  ;;  %s3393_s25 = smov 20  }
  0x16   : > { %v265_v0 = vld [vmem:[%s3476_s14 + $0xc] sm:$0xff]   ;;  %v2456_v1 = vld [vmem:[%s3476_s14] sm:$0xff]   ;;  %v264_v2 = vld [vmem:[%s3476_s14 + $0x8] sm:$0x1]  ;;  %s3394_s26 = smov 24   ;;  %s3395_s27 = smov 28  }
  0x17   : > { %v3481_v3 = vunpack.c.l.bf16 %v265_v0  ;;  %v3483_v4 = vunpack.c.h.bf16 %v265_v0  ;;  %v3485_v5 = vunpack.c.l.bf16 %v2456_v1  ;;  %v3487_v6 = vunpack.c.h.bf16 %v2456_v1  ;;  %v2479_v7 = vld [vmem:[%s3476_s14 + $0x18] sm:$0xff]   ;;  %v3491_v8 = vld [vmem:[%s3476_s14 + $0x20] sm:$0x1]  ;;  %v267_v9 = vld [vmem:[%s3476_s14 + $0x14] sm:$0x1]  ;;  %s3396_s28 = smov 32  }
  0x18   : > { %v300_v10 = vunpack.c.l.bf16 %v264_v2  ;;  %v3494_v11 = vunpack.c.l.bf16 %v2479_v7  ;;  %v3496_v12 = vunpack.c.h.bf16 %v2479_v7  ;;  %v306_v13 = vunpack.c.l.bf16 %v3491_v8  ;;  %v271_v18 = vld [vmem:[%s3476_s14 + $0x24] sm:$0xff]   ;;  %v3513_v27 = vld [vmem:[%s3476_s14 + $0x2c] sm:$0x1]  ;;  %v2480_v32 = vld [vmem:[%s3476_s14 + $0x30] sm:$0xff]  }
  0x19   : > { %v2621_v14 = vpack.i.bf16 %v3483_v4, %v3481_v3  ;;  %v365_v15 = vrot.slane %v3485_v5, 1  ;;  %v366_v16 = vrot.slane %v3487_v6, 1  ;;  %v303_v17 = vunpack.c.l.bf16 %v267_v9  ;;  %v3522_v33 = vld [vmem:[%s3476_s14 + $0x38] sm:$0x1] }
  0x1a   : > { %v368_v19 = vrot.slane %v300_v10, 1  ;;  %v375_v20 = vrot.slane %v3494_v11, 1  ;;  %v376_v21 = vrot.slane %v3496_v12, 1  ;;  %v378_v22 = vrot.slane %v306_v13, 1 }
  0x1b   : > { %2622 = vrot.lane.b32.xlu1 %v2621_v14, %s3389_s15  ;;  %v367_v23 = vsel %vm364_vm0, %v365_v15, %v366_v16  ;;  %v370_v24 = vrot.slane %v3481_v3, 1  ;;  %v371_v25 = vrot.slane %v3483_v4, 1  ;;  %v373_v26 = vrot.slane %v303_v17, 1 }
  0x1c   : > { %v369_v28 = vsel %vm364_vm0, %v366_v16, %v368_v19  ;;  %v377_v29 = vsel %vm364_vm0, %v375_v20, %v376_v21  ;;  %v379_v30 = vsel %vm364_vm0, %v376_v21, %v378_v22  ;;  %v3518_v31 = vunpack.c.l.bf16 %v271_v18  ;;  %v2481_v16 = vld [vmem:[%s3476_s14 + $0x48] sm:$0xff]   ;;  %v282_v22 = vld [vmem:[%s3476_s14 + $0x50] sm:$0x1] }
  0x1d   : > { %v2626_v34 = vpack.i.bf16 %v369_v28, %v367_v23  ;;  %v3524_v35 = vpack.i.bf16 %v379_v30, %v377_v29  ;;  %v372_v36 = vsel %vm364_vm0, %v370_v24, %v371_v25  ;;  %v374_v37 = vsel %vm364_vm0, %v371_v25, %v373_v26  ;;  %v283_v26 = vld [vmem:[%s3476_s14 + $0x54] sm:$0xff]  }
  0x1e   : > { %v2631_v38 = vpack.i.bf16 %v374_v37, %v372_v36  ;;  %v3528_v39 = vunpack.c.h.bf16 %v271_v18  ;;  %v309_v40 = vunpack.c.l.bf16 %v3513_v27  ;;  %v380_v41 = vrot.slane %v3518_v31, 1  ;;  %v285_v36 = vld [vmem:[%s3476_s14 + $0x5c] sm:$0x1] }
  0x1f   : > { %2627 = vrot.lane.b32.xlu0 %v2626_v34, %s3390_s16  ;;  %2637 = vrot.lane.b32.xlu1 %v3524_v35, %s3390_s16  ;;  %v3535_v42 = vunpack.c.l.bf16 %v2480_v32  ;;  %v3537_v43 = vunpack.c.h.bf16 %v2480_v32  ;;  %v312_v44 = vunpack.c.l.bf16 %v3522_v33  ;;  %v416_v45 = vrot.slane %v3485_v5, 2 }
  0x20   : > { %v381_v46 = vrot.slane %v3528_v39, 1  ;;  %v383_v47 = vrot.slane %v309_v40, 1  ;;  %v417_v48 = vrot.slane %v3487_v6, 2  ;;  %v419_v49 = vrot.slane %v300_v10, 2 }
  0x21   : > { %v385_v50 = vrot.slane %v3535_v42, 1  ;;  %v386_v51 = vrot.slane %v3537_v43, 1  ;;  %v388_v52 = vrot.slane %v312_v44, 1  ;;  %v421_v53 = vrot.slane %v3481_v3, 2 }
  0x22   : > { %v382_v54 = vsel %vm364_vm0, %v380_v41, %v381_v46  ;;  %v384_v55 = vsel %vm364_vm0, %v381_v46, %v383_v47  ;;  %v418_v56 = vsel %vm415_vm1, %v416_v45, %v417_v48  ;;  %v420_v57 = vsel %vm415_vm1, %v417_v48, %v419_v49 }
  0x23   : > { %2632 = vrot.lane.b32.xlu0 %v2631_v38, %s3390_s16  ;;  %v3553_v58 = vpack.i.bf16 %v384_v55, %v382_v54  ;;  %v387_v59 = vsel %vm364_vm0, %v385_v50, %v386_v51  ;;  %v389_v60 = vsel %vm364_vm0, %v386_v51, %v388_v52  ;;  %v422_v62 = vrot.slane %v3483_v4, 2 }
  0x24   : > { %v3557_v61 = vpack.i.bf16 %v389_v60, %v387_v59  ;;  %v424_v63 = vrot.slane %v303_v17, 2  ;;  %v2651_v0 = vpack.i.bf16 %v420_v57, %v418_v56  ;;  %v2661_v9 = vpack.i.bf16 %v3496_v12, %v3494_v11  ;;  %v2482_v57 = vld [vmem:[%s3476_s14 + $0x60] sm:$0xff]  }
  0x25   : > { %2642 = vrot.lane.b32.xlu1 %v3553_v58, %s3390_s16  ;;  %v423_v1 = vsel %vm415_vm1, %v421_v53, %v422_v62  ;;  %v426_v10 = vrot.slane %v3494_v11, 2  ;;  %v427_v14 = vrot.slane %v3496_v12, 2  ;;  %v429_v15 = vrot.slane %v306_v13, 2 }
  0x26   : > { %v425_v2 = vsel %vm415_vm1, %v422_v62, %v424_v63  ;;  %v431_v19 = vrot.slane %v3518_v31, 2  ;;  %v432_v20 = vrot.slane %v3528_v39, 2  ;;  %v3584_v8 = vpack.i.bf16 %v3528_v39, %v3518_v31 }
  0x27   : > { %2647 = vrot.lane.b32.xlu0 %v3557_v61, %s3390_s16  ;;  %v2656_v7 = vpack.i.bf16 %v425_v2, %v423_v1  ;;  %v428_v17 = vsel %vm415_vm1, %v426_v10, %v427_v14  ;;  %v430_v18 = vsel %vm415_vm1, %v427_v14, %v429_v15  ;;  %v3586_v13 = vunpack.c.l.bf16 %v2481_v16  ;;  %v289_v15 = vld [vmem:[%s3476_s14 + $0x6c] sm:$0xff]  }
  0x28   : > { %v3588_v21 = vunpack.c.h.bf16 %v2481_v16  ;;  %v2681_v23 = vpack.i.bf16 %v430_v18, %v428_v17  ;;  %v434_v24 = vrot.slane %v309_v40, 2  ;;  %v3595_v25 = vpack.i.bf16 %v3537_v43, %v3535_v42 }
  0x29   : > { %2652 = vrot.lane.b32.xlu1 %v2651_v0, %s3391_s17  ;;  %v433_v27 = vsel %vm415_vm1, %v431_v19, %v432_v20  ;;  %v318_v28 = vunpack.c.l.bf16 %v282_v22  ;;  %v395_v29 = vrot.slane %v3586_v13, 1  ;;  %v446_v32 = vrot.slane %v3586_v13, 2 }
  0x2a   : > { %v396_v30 = vrot.slane %v3588_v21, 1  ;;  %v447_v34 = vrot.slane %v3588_v21, 2  ;;  %v436_v37 = vrot.slane %v3535_v42, 2  ;;  %v3606_v41 = vunpack.c.l.bf16 %v283_v26 }
  0x2b   : > { %2657 = vrot.lane.b32.xlu0 %v2656_v7, %s3391_s17  ;;  %v449_v40 = vrot.slane %v318_v28, 2  ;;  %v435_v45 = vsel %vm415_vm1, %v432_v20, %v434_v24  ;;  %v3612_v48 = vunpack.c.h.bf16 %v283_v26  ;;  %v321_v51 = vunpack.c.l.bf16 %v285_v36  ;;  %v291_v24 = vld [vmem:[%s3476_s14 + $0x74] sm:$0x1] }
  0x2c   : > { %v397_v46 = vsel %vm364_vm0, %v395_v29, %v396_v30  ;;  %v448_v47 = vsel %vm415_vm1, %v446_v32, %v447_v34  ;;  %v400_v52 = vrot.slane %v3606_v41, 1  ;;  %v437_v53 = vrot.slane %v3537_v43, 2 }
  0x2d   : > { %2667 = vrot.lane.b32.xlu1 %v2631_v38, %s3392_s19  ;;  %v398_v38 = vrot.slane %v318_v28, 1  ;;  %v450_v50 = vsel %vm415_vm1, %v447_v34, %v449_v40  ;;  %v401_v56 = vrot.slane %v3612_v48, 1  ;;  %v403_v59 = vrot.slane %v321_v51, 1 }
  0x2e   : > { %v3622_v55 = vpack.i.bf16 %v450_v50, %v448_v47  ;;  %v451_v62 = vrot.slane %v3606_v41, 2  ;;  %v454_v63 = vrot.slane %v321_v51, 2  ;;  %v3632_v1 = vunpack.c.l.bf16 %v2482_v57  ;;  %v2483_v51 = vld [vmem:[%s3476_s14 + $0x78] sm:$0xff]  }
  0x2f   : > { %2662 = vrot.lane.b32.xlu0 %v2661_v9, %s3389_s15  ;;  %v399_v49 = vsel %vm364_vm0, %v396_v30, %v398_v38  ;;  %v402_v60 = vsel %vm364_vm0, %v400_v52, %v401_v56  ;;  %v404_v0 = vsel %vm364_vm0, %v401_v56, %v403_v59  ;;  %v3634_v2 = vunpack.c.h.bf16 %v2482_v57  ;;  %v3680_v57 = vld [vmem:[%s3476_s14 + $0x44] sm:$0x1] }
  0x30   : > { %v3620_v54 = vpack.i.bf16 %v399_v49, %v397_v46  ;;  %v2711_v16 = vpack.i.bf16 %v435_v45, %v433_v27  ;;  %v439_v17 = vrot.slane %v312_v44, 2  ;;  %v405_v20 = vrot.slane %v3632_v1, 1  ;;  %v277_v49 = vld [vmem:[%s3476_s14 + $0x3c] sm:$0xff]  }
  0x31   : > { %2677 = vrot.lane.b32.xlu1 %v2656_v7, %s3393_s25  ;;  %v288_v7 = vld [vmem:[%s3476_s14 + $0x68] sm:$0x1]  ;;  %v406_v22 = vrot.slane %v3634_v2, 1  ;;  %v456_v26 = vrot.slane %v3632_v1, 2  ;;  %v457_v28 = vrot.slane %v3634_v2, 2  ;;  %v3654_v29 = vunpack.c.l.bf16 %v289_v15 }
  0x32   : > { %v324_v19 = vunpack.c.l.bf16 %v288_v7  ;;  %v3658_v30 = vunpack.c.h.bf16 %v289_v15  ;;  %v327_v34 = vunpack.c.l.bf16 %v291_v24  ;;  %v438_v52 = vsel %vm415_vm1, %v436_v37, %v437_v53  ;;  %v295_v24 = vld [vmem:[%s3476_s14 + $0x84] sm:$0xff]  }
  0x33   : > { %2672 = vrot.lane.b32.xlu0 %v3524_v35, %s3392_s19  ;;  %v407_v33 = vsel %vm364_vm0, %v405_v20, %v406_v22  ;;  %v458_v32 = vsel %vm415_vm1, %v456_v26, %v457_v28  ;;  %v410_v36 = vrot.slane %v3654_v29, 1  ;;  %v440_v56 = vsel %vm415_vm1, %v437_v53, %v439_v17  ;;  %v3021_v17 = vld [vmem:[%s4652_s1 + $0x10] ss:$0 sps:$4 sm:$0x33]  }
  0x34   : > { %v408_v44 = vrot.slane %v324_v19, 1  ;;  %v459_v27 = vrot.slane %v324_v19, 2  ;;  %v411_v40 = vrot.slane %v3658_v30, 1  ;;  %v413_v47 = vrot.slane %v327_v34, 1  ;;  %2562 = vmatprep.subr.msk.bf16.mxu0 %vm1208_vm2, %v3021_v17 }
  0x35   : > { %2687 = vrot.lane.b32.xlu1 %v2661_v9, %s3394_s26  ;;  %v3638_v9 = vpack.i.bf16 %v404_v0, %v402_v60  ;;  %v461_v60 = vrot.slane %v3654_v29, 2  ;;  %v3689_v0 = vunpack.c.l.bf16 %v277_v49  ;;  %v3691_v37 = vunpack.c.l.bf16 %v2483_v51 }
  0x36   : > { %v409_v38 = vsel %vm364_vm0, %v406_v22, %v408_v44  ;;  %v412_v50 = vsel %vm364_vm0, %v410_v36, %v411_v40  ;;  %v414_v59 = vsel %vm364_vm0, %v411_v40, %v413_v47  ;;  %v3693_v53 = vunpack.c.h.bf16 %v2483_v51 }
  0x37   : > { %2682 = vrot.lane.b32.xlu0 %v2681_v23, %s3393_s25  ;;  %v3666_v45 = vpack.i.bf16 %v409_v38, %v407_v33  ;;  %v3697_v7 = vunpack.c.h.bf16 %v277_v49  ;;  %v3705_v19 = vpack.i.bf16 %v440_v56, %v438_v52  ;;  %v3022_v33 = vld [vmem:[%s4652_s1 + $0x8] sm:$0xff]   ;;  %v1210_v36 = vsel %vm1208_vm2, %v3021_v17, 0 }
  0x38   : > { %v470_v26 = vrot.slane %v3693_v53, 1  ;;  %v3721_v38 = vunpack.c.l.bf16 %v295_v24  ;;  %2511 = vmatpush3.bf16.msra.mxu0 %v1210_v36 }
  0x39   : > { %2697 = vrot.lane.b32.xlu1 %v3524_v35, %s3395_s27  ;;  %v452_v35 = vrot.slane %v3612_v48, 2  ;;  %v391_v51 = vrot.slane %v3697_v7, 1  ;;  %2512 = vmatprep.subr.bf16.mxu0 %v3022_v33 }
  0x3b   : > { %2692 = vrot.lane.b32.xlu0 %v3584_v8, %s3394_s26  ;;  %v453_v10 = vsel %vm415_vm1, %v451_v62, %v452_v35  ;;  %v455_v14 = vsel %vm415_vm1, %v452_v35, %v454_v63  ;;  %v3685_v62 = vpack.i.bf16 %v414_v59, %v412_v50  ;;  %v464_v35 = vrot.slane %v327_v34, 2  ;;  %v294_v63 = vld [vmem:[%s3476_s14 + $0x80] sm:$0x1] }
  0x3c   : > { %v3645_v18 = vpack.i.bf16 %v455_v14, %v453_v10  ;;  %v315_v10 = vunpack.c.l.bf16 %v3680_v57  ;;  %v330_v22 = vunpack.c.l.bf16 %v294_v63  ;;  %v3727_v50 = vunpack.c.h.bf16 %v295_v24  ;;  %v3023_v57 = vld [vmem:[%s4652_s1] sm:$0xff]   ;;  %2513 = vmatpush3.bf16.msra.mxu0 %v3022_v33 }
  0x3d   : > { %2707 = vrot.lane.b32.xlu1 %v2681_v23, %s3396_s28  ;;  %v2761_v63 = vpack.i.bf16 %v3697_v7, %v3689_v0  ;;  %2514 = vmatprep.subr.bf16.mxu0 %v3023_v57 }
  0x3e   : > { %v472_v44 = vrot.slane %v330_v22, 1  ;;  %v393_v59 = vrot.slane %v315_v10, 1  ;;  %v488_v24 = vrot.slane %v3727_v50, 2 }
  0x3f   : > { %2702 = vrot.lane.b32.xlu0 %v3553_v58, %s3395_s27 }
  0x40   : > { %v473_v40 = vsel %vm364_vm0, %v470_v26, %v472_v44  ;;  %v394_v44 = vsel %vm364_vm0, %v391_v51, %v393_v59  ;;  %2515 = vmatpush3.bf16.msra.mxu0 %v3023_v57 }
  0x41   : > { %2717 = vrot.lane.b32.xlu1 %v2681_v23, %s3391_s17  ;;  %v460_v23 = vsel %vm415_vm1, %v457_v28, %v459_v27  ;;  %v474_v28 = vrot.slane %v3691_v37, 2  ;;  %v475_v27 = vrot.slane %v3693_v53, 2 }
  0x42   : > { %v3668_v46 = vpack.i.bf16 %v460_v23, %v458_v32  ;;  %v477_v32 = vrot.slane %v330_v22, 2  ;;  %v297_v23 = vld [vmem:[%s3476_s14 + $0x8c] sm:$0x1] }
  0x43   : > { %2712 = vrot.lane.b32.xlu0 %v2711_v16, %s3396_s28  ;;  %v476_v47 = vsel %vm415_vm1, %v474_v28, %v475_v27  ;;  %v444_v28 = vrot.slane %v315_v10, 2 }
  0x44   : > { %v478_v49 = vsel %vm415_vm1, %v475_v27, %v477_v32 }
  0x45   : > { %2727 = vrot.lane.b32.xlu1 %v3584_v8, %s3389_s15  ;;  %v462_v8 = vrot.slane %v3658_v30, 2  ;;  %v3735_v56 = vpack.i.bf16 %v478_v49, %v476_v47  ;;  %v2806_v47 = vpack.i.bf16 %v3588_v21, %v3586_v13  ;;  %v2836_v49 = vpack.i.bf16 %v3612_v48, %v3606_v41 }
  0x47   : > { %2722 = vrot.lane.b32.xlu0 %v2711_v16, %s3391_s17  ;;  %v463_v14 = vsel %vm415_vm1, %v461_v60, %v462_v8  ;;  %v465_v15 = vsel %vm415_vm1, %v462_v8, %v464_v35  ;;  %v333_v60 = vunpack.c.l.bf16 %v297_v23  ;;  %v482_v8 = vrot.slane %v3721_v38, 1 }
  0x48   : > { %v3707_v20 = vpack.i.bf16 %v465_v15, %v463_v14  ;;  %v483_v35 = vrot.slane %v3727_v50, 1  ;;  %v441_v14 = vrot.slane %v3689_v0, 2  ;;  %v487_v15 = vrot.slane %v3721_v38, 2 }
  0x49   : > { %2737 = vrot.lane.b32.xlu1 %v3553_v58, %s3392_s19  ;;  %v469_v58 = vrot.slane %v3691_v37, 1  ;;  %v485_v22 = vrot.slane %v333_v60, 1 }
  0x4a   : > { %v3749_v17 = vsel %vm364_vm0, %v482_v8, %v483_v35  ;;  %v3761_v27 = vsel %vm415_vm1, %v487_v15, %v488_v24 }
  0x4b   : > { %2732 = vrot.lane.b32.xlu0 %v3595_v25, %s3389_s15  ;;  %v471_v34 = vsel %vm364_vm0, %v469_v58, %v470_v26  ;;  %v490_v58 = vrot.slane %v333_v60, 2  ;;  %v442_v26 = vrot.slane %v3697_v7, 2  ;;  %v3758_v33 = vsel %vm364_vm0, %v483_v35, %v485_v22 }
  0x4c   : > { %v3733_v52 = vpack.i.bf16 %v473_v40, %v471_v34  ;;  %v3006_v34 = vpack.i.bf16 %v3758_v33, %v3749_v17 }
  0x4d   : > { %2747 = vrot.lane.b32.xlu1 %v2711_v16, %s3393_s25  ;;  %v390_v16 = vrot.slane %v3689_v0, 1  ;;  %v3764_v32 = vsel %vm415_vm1, %v488_v24, %v490_v58  ;;  %v443_v23 = vsel %vm415_vm1, %v441_v14, %v442_v26  ;;  %v445_v40 = vsel %vm415_vm1, %v442_v26, %v444_v28 }
  0x4e   : > { %v3016_v10 = vpack.i.bf16 %v3764_v32, %v3761_v27 }
  0x4f   : > { %2742 = vrot.lane.b32.xlu0 %v3557_v61, %s3392_s19 }
  0x51   : > { %2757 = vrot.lane.b32.xlu1 %v3595_v25, %s3394_s26  ;;  %v392_v25 = vsel %vm364_vm0, %v390_v16, %v391_v51  ;;  %v2916_v16 = vpack.i.bf16 %v3658_v30, %v3654_v29 }
  0x52   : > { %v2771_v36 = vpack.i.bf16 %v394_v44, %v392_v25 }
  0x53   : > { %2752 = vrot.lane.b32.xlu0 %v3705_v19, %s3393_s25 }
  0x55   : > { %2767 = vrot.lane.b32.xlu1 %v3557_v61, %s3395_s27  ;;  %v2781_v61 = vpack.i.bf16 %v445_v40, %v443_v23 }
  0x57   : > { %2762 = vrot.lane.b32.xlu0 %v2761_v63, %s3394_s26 }
  0x59   : > { %2777 = vrot.lane.b32.xlu1 %v3705_v19, %s3396_s28 }
  0x5b   : > { %2772 = vrot.lane.b32.xlu0 %v2771_v36, %s3395_s27 }
  0x5d   : > { %2787 = vrot.lane.b32.xlu1 %v2771_v36, %s3390_s16 }
  0x5f   : > { %2782 = vrot.lane.b32.xlu0 %v2781_v61, %s3396_s28 }
  0x61   : > { %2797 = vrot.lane.b32.xlu1 %v2781_v61, %s3391_s17 }
  0x63   : > { %2792 = vrot.lane.b32.xlu0 %v3705_v19, %s3391_s17  ;;  %v2886_v19 = vpack.i.bf16 %v3634_v2, %v3632_v1 }
  0x65   : > { %2807 = vrot.lane.b32.xlu1 %v2806_v47, %s3389_s15 }
  0x67   : > { %2802 = vrot.lane.b32.xlu0 %v2761_v63, %s3389_s15 }
  0x69   : > { %2817 = vrot.lane.b32.xlu1 %v3620_v54, %s3392_s19 }
  0x6b   : > { %2812 = vrot.lane.b32.xlu0 %v2771_v36, %s3392_s19 }
  0x6d   : > { %2827 = vrot.lane.b32.xlu1 %v3622_v55, %s3393_s25 }
  0x6f   : > { %2822 = vrot.lane.b32.xlu0 %v2781_v61, %s3393_s25 }
  0x71   : > { %2837 = vrot.lane.b32.xlu1 %v2836_v49, %s3394_s26 }
  0x73   : > { %2832 = vrot.lane.b32.xlu0 %v2806_v47, %s3394_s26 }
  0x75   : > { %2847 = vrot.lane.b32.xlu1 %v3638_v9, %s3395_s27 }
  0x77   : > { %2842 = vrot.lane.b32.xlu0 %v3620_v54, %s3395_s27 }
  0x79   : > { %2857 = vrot.lane.b32.xlu1 %v3620_v54, %s3390_s16 }
  0x7b   : > { %2852 = vrot.lane.b32.xlu0 %v3622_v55, %s3396_s28 }
  0x7d   : > { %2867 = vrot.lane.b32.xlu1 %v3638_v9, %s3390_s16 }
  0x7f   : > { %2862 = vrot.lane.b32.xlu0 %v3645_v18, %s3396_s28 }
  0x81   : > { %2877 = vrot.lane.b32.xlu1 %v3645_v18, %s3391_s17 }
  0x83   : > { %2872 = vrot.lane.b32.xlu0 %v3622_v55, %s3391_s17 }
  0x85   : > { %2887 = vrot.lane.b32.xlu1 %v2886_v19, %s3389_s15 }
  0x87   : > { %2882 = vrot.lane.b32.xlu0 %v2836_v49, %s3389_s15 }
  0x89   : > { %2897 = vrot.lane.b32.xlu1 %v3666_v45, %s3392_s19 }
  0x8b   : > { %2892 = vrot.lane.b32.xlu0 %v3638_v9, %s3392_s19 }
  0x8d   : > { %2907 = vrot.lane.b32.xlu1 %v3668_v46, %s3393_s25  ;;  %v3823_v54 = vpop.permute.xlu1 %2622 }
  0x8e   : > { %v2625_v26 = vunpack.i.h.bf16 %v3823_v54 }
  0x8f   : > { %2902 = vrot.lane.b32.xlu0 %v3645_v18, %s3393_s25 }
  0x91   : > { %2917 = vrot.lane.b32.xlu1 %v2916_v16, %s3394_s26  ;;  %v2628_v55 = vpop.permute.xlu0 %2627  ;;  %v3830_v51 = vpop.permute.xlu1 %2637 }
  0x92   : > { %v2630_v14 = vunpack.i.h.bf16 %v2628_v55  ;;  %v2629_v15 = vunpack.i.l.bf16 %v2628_v55 }
  0x93   : > { %2912 = vrot.lane.b32.xlu0 %v2886_v19, %s3394_s26 }
  0x94   : > { %v974_v28 = vsel %vm972_vm3, %v3487_v6, %v2630_v14  ;;  %v973_v44 = vsel %vm972_vm3, %v3485_v5, %v2629_v15 }
  0x95   : > { %2927 = vrot.lane.b32.xlu1 %v3685_v62, %s3395_s27  ;;  %v2633_v9 = vpop.permute.xlu0 %2632 }
  0x97   : > { %v3835_v57 = vpop.permute.xlu1 %2642  ;;  %2922 = vrot.lane.b32.xlu0 %v3666_v45, %s3395_s27 }
  0x99   : > { %2937 = vrot.lane.b32.xlu1 %v3666_v45, %s3390_s16  ;;  %v3841_v18 = vpop.permute.xlu0 %2647  ;;  %v3855_v45 = vpack.i.bf16 %v3693_v53, %v3691_v37  ;;  %v2635_v37 = vunpack.i.h.bf16 %v2633_v9  ;;  %v2634_v53 = vunpack.i.l.bf16 %v2633_v9 }
  0x9b   : > { %v2653_v59 = vpop.permute.xlu1 %2652  ;;  %2932 = vrot.lane.b32.xlu0 %v3668_v46, %s3396_s28  ;;  %v976_v5 = vsel %vm972_vm3, %v3483_v4, %v2635_v37  ;;  %v975_v19 = vsel %vm972_vm3, %v3481_v3, %v2634_v53 }
  0x9c   : > { %v2655_v22 = vunpack.i.h.bf16 %v2653_v59  ;;  %v2654_v24 = vunpack.i.l.bf16 %v2653_v59 }
  0x9d   : > { %2947 = vrot.lane.b32.xlu1 %v3685_v62, %s3390_s16  ;;  %v2658_v60 = vpop.permute.xlu0 %2657 }
  0x9e   : > { %v994_v36 = vsel %vm993_vm4, %v973_v44, %v2654_v24  ;;  %v995_v23 = vsel %vm993_vm4, %v974_v28, %v2655_v22  ;;  %v2660_v40 = vunpack.i.h.bf16 %v2658_v60  ;;  %v2659_v61 = vunpack.i.l.bf16 %v2658_v60 }
  0x9f   : > { %v2668_v8 = vpop.permute.xlu1 %2667  ;;  %2942 = vrot.lane.b32.xlu0 %v3707_v20, %s3396_s28 }
  0xa0   : > { %v2669_v49 = vunpack.i.l.bf16 %v2668_v8  ;;  %v996_v14 = vsel %vm993_vm4, %v975_v19, %v2659_v61  ;;  %v997_v15 = vsel %vm993_vm4, %v976_v5, %v2660_v40 }
  0xa1   : > { %2957 = vrot.lane.b32.xlu1 %v3707_v20, %s3391_s17  ;;  %v3851_v35 = vpop.permute.xlu0 %2662 }
  0xa2   : > { %v2664_v6 = vunpack.i.l.bf16 %v3851_v35  ;;  %v2665_v24 = vunpack.i.h.bf16 %v3851_v35 }
  0xa3   : > { %v2678_v63 = vpop.permute.xlu1 %2677  ;;  %2952 = vrot.lane.b32.xlu0 %v3668_v46, %s3391_s17  ;;  %v2996_v46 = vpack.i.bf16 %v3727_v50, %v3721_v38  ;;  %v2624_v38 = vunpack.i.l.bf16 %v3823_v54  ;;  %v2670_v50 = vunpack.i.h.bf16 %v2668_v8  ;;  %v1016_v54 = vsel %vm1014_vm5, %v995_v23, %v2625_v26 }
  0xa4   : > { %v2679_v55 = vunpack.i.l.bf16 %v2678_v63  ;;  %v1017_v37 = vsel %vm1014_vm5, %v996_v14, %v2664_v6 }
  0xa5   : > { %2967 = vrot.lane.b32.xlu1 %v3855_v45, %s3389_s15  ;;  %v3861_v58 = vpop.permute.xlu0 %2672  ;;  %v1015_v59 = vsel %vm1014_vm5, %v994_v36, %v2624_v38 }
  0xa6   : > { %v2675_v26 = vunpack.i.h.bf16 %v3861_v58  ;;  %v2674_v28 = vunpack.i.l.bf16 %v3861_v58 }
  0xa7   : > { %v2688_v25 = vpop.permute.xlu1 %2687  ;;  %2962 = vrot.lane.b32.xlu0 %v2916_v16, %s3389_s15  ;;  %v2680_v16 = vunpack.i.h.bf16 %v2678_v63  ;;  %v1036_v63 = vsel %vm1035_vm6, %v1015_v59, %v2669_v49 }
  0xa8   : > { %v2690_v60 = vunpack.i.h.bf16 %v2688_v25  ;;  %v2689_v8 = vunpack.i.l.bf16 %v2688_v25  ;;  %v1057_v53 = vsel %vm1056_vm7, %v1036_v63, %v2679_v55 }
  0xa9   : > { %2977 = vrot.lane.b32.xlu1 %v3733_v52, %s3392_s19  ;;  %v2683_v47 = vpop.permute.xlu0 %2682 }
  0xaa   : > { %v1078_v36 = vsel %vm1077_vm8, %v1057_v53, %v2689_v8  ;;  %v2685_v61 = vunpack.i.h.bf16 %v2683_v47  ;;  %v2684_v38 = vunpack.i.l.bf16 %v2683_v47  ;;  %v1038_v47 = vsel %vm1035_vm6, %v1017_v37, %v2674_v28 }
  0xab   : > { %v2698_v9 = vpop.permute.xlu1 %2697  ;;  %2972 = vrot.lane.b32.xlu0 %v3685_v62, %s3392_s19  ;;  %v1037_v62 = vsel %vm1035_vm6, %v1016_v54, %v2670_v50  ;;  %v2645_v28 = vunpack.i.h.bf16 %v3835_v57 }
  0xac   : > { %v2700_v4 = vunpack.i.h.bf16 %v2698_v9  ;;  %v2699_v22 = vunpack.i.l.bf16 %v2698_v9  ;;  %v1058_v25 = vsel %vm1056_vm7, %v1037_v62, %v2680_v16  ;;  %v1018_v16 = vsel %vm1014_vm5, %v997_v15, %v2665_v24 }
  0xad   : > { %2987 = vrot.lane.b32.xlu1 %v3735_v56, %s3393_s25  ;;  %v2693_v3 = vpop.permute.xlu0 %2692  ;;  %v1079_v23 = vsel %vm1077_vm8, %v1058_v25, %v2690_v60  ;;  %v1039_v54 = vsel %vm1035_vm6, %v1018_v16, %v2675_v26  ;;  %v1059_v60 = vsel %vm1056_vm7, %v1038_v47, %v2684_v38  ;;  %v2639_v26 = vunpack.i.l.bf16 %v3830_v51 }
  0xae   : > { %v1099_v49 = vsel %vm1098_vm9, %v1078_v36, %v2699_v22  ;;  %v1100_v6 = vsel %vm1098_vm9, %v1079_v23, %v2700_v4  ;;  %v2695_v58 = vunpack.i.h.bf16 %v2693_v3  ;;  %v2694_v5 = vunpack.i.l.bf16 %v2693_v3 }
  0xaf   : > { %v2708_v44 = vpop.permute.xlu1 %2707  ;;  %2982 = vrot.lane.b32.xlu0 %v3707_v20, %s3393_s25  ;;  %v1060_v8 = vsel %vm1056_vm7, %v1039_v54, %v2685_v61  ;;  %v2644_v36 = vunpack.i.l.bf16 %v3835_v57  ;;  %v980_v61 = vsel %vm972_vm3, %v3528_v39, %v2645_v28 }
  0xb0   : > { %v2710_v40 = vunpack.i.h.bf16 %v2708_v44  ;;  %v2709_v35 = vunpack.i.l.bf16 %v2708_v44  ;;  %v1080_v15 = vsel %vm1077_vm8, %v1059_v60, %v2694_v5 }
  0xb1   : > { %2997 = vrot.lane.b32.xlu1 %v2996_v46, %s3394_s26  ;;  %v2703_v50 = vpop.permute.xlu0 %2702  ;;  %v979_v57 = vsel %vm972_vm3, %v3518_v31, %v2644_v36 }
  0xb2   : > { %v1120_v19 = vsel %vm1119_vm10, %v1099_v49, %v2709_v35  ;;  %v1121_v20 = vsel %vm1119_vm10, %v1100_v6, %v2710_v40  ;;  %v2705_v55 = vunpack.i.h.bf16 %v2703_v50  ;;  %v2704_v9 = vunpack.i.l.bf16 %v2703_v50 }
  0xb3   : > { %v2718_v59 = vpop.permute.xlu1 %2717  ;;  %2992 = vrot.lane.b32.xlu0 %v3855_v45, %s3394_s26  ;;  %v1140_v46 = vpack.c.bf16 %v1121_v20, %v1120_v19  ;;  %v1081_v45 = vsel %vm1077_vm8, %v1060_v8, %v2695_v58  ;;  %v977_v35 = vsel %vm972_vm3, %v3494_v11, %v2639_v26 }
  0xb4   : > { %v1101_v3 = vsel %vm1098_vm9, %v1080_v15, %v2704_v9  ;;  %v1102_v63 = vsel %vm1098_vm9, %v1081_v45, %v2705_v55  ;;  %v2720_v27 = vunpack.i.h.bf16 %v2718_v59  ;;  %v2719_v32 = vunpack.i.l.bf16 %v2718_v59 }
  0xb5   : > { %3007 = vrot.lane.b32.xlu1 %v3006_v34, %s3395_s27  ;;  %2516 = vmatprep.mubr.msk.bf16.mxu0 %vm1177_vm11, %v1140_v46  ;;  %v2713_v14 = vpop.permute.xlu0 %2712 }
  0xb6   : > { %v2715_v4 = vunpack.i.h.bf16 %v2713_v14  ;;  %v2714_v22 = vunpack.i.l.bf16 %v2713_v14 }
  0xb7   : > { %v2728_v62 = vpop.permute.xlu1 %2727  ;;  %3002 = vrot.lane.b32.xlu0 %v3733_v52, %s3395_s27  ;;  %v2640_v52 = vunpack.i.h.bf16 %v3830_v51 }
  0xb8   : > { %v1122_v17 = vsel %vm1119_vm10, %v1101_v3, %v2714_v22  ;;  %v1123_v33 = vsel %vm1119_vm10, %v1102_v63, %v2715_v4  ;;  %v2729_v40 = vunpack.i.l.bf16 %v2728_v62 }
  0xb9   : > { %v1141_v34 = vpack.c.bf16 %v1123_v33, %v1122_v17  ;;  %3017 = vrot.lane.b32.xlu1 %v3016_v10, %s3396_s28  ;;  %v2723_v24 = vpop.permute.xlu0 %2722  ;;  %v978_v23 = vsel %vm972_vm3, %v3496_v12, %v2640_v52  ;;  %v998_v12 = vsel %vm993_vm4, %v977_v35, %v2719_v32 }
  0xba   : > { %v2725_v51 = vunpack.i.h.bf16 %v2723_v24  ;;  %v2724_v38 = vunpack.i.l.bf16 %v2723_v24  ;;  %v999_v5 = vsel %vm993_vm4, %v978_v23, %v2720_v27  ;;  %v1019_v11 = vsel %vm1014_vm5, %v998_v12, %v2729_v40 }
  0xbb   : > { %v2738_v37 = vpop.permute.xlu1 %2737  ;;  %3012 = vrot.lane.b32.xlu0 %v3735_v56, %s3396_s28  ;;  %2517 = vmatmul.mubr.msk.bf16.vlgmr.msra.gmra.mxu0 %vm1177_vm11, %v1141_v34  ;;  %v2730_v56 = vunpack.i.h.bf16 %v2728_v62 }
  0xbc   : > { %v2740_v49 = vunpack.i.h.bf16 %v2738_v37  ;;  %v2739_v6 = vunpack.i.l.bf16 %v2738_v37  ;;  %v1001_v59 = vsel %vm993_vm4, %v980_v61, %v2725_v51  ;;  %v1000_v31 = vsel %vm993_vm4, %v979_v57, %v2724_v38 }
  0xbd   : > { %v2733_v53 = vpop.permute.xlu0 %2732  ;;  %v1020_v39 = vsel %vm1014_vm5, %v999_v5, %v2730_v56 }
  0xbe   : > { %v2734_v58 = vunpack.i.l.bf16 %v2733_v53  ;;  %v1040_v60 = vsel %vm1035_vm6, %v1019_v11, %v2739_v6  ;;  %v1041_v8 = vsel %vm1035_vm6, %v1020_v39, %v2740_v49  ;;  %v2735_v14 = vunpack.i.h.bf16 %v2733_v53 }
  0xbf   : > { %v2748_v25 = vpop.permute.xlu1 %2747 }
  0xc0   : > { %v2750_v19 = vunpack.i.h.bf16 %v2748_v25  ;;  %v2749_v20 = vunpack.i.l.bf16 %v2748_v25  ;;  %v1021_v15 = vsel %vm1014_vm5, %v1000_v31, %v2734_v58  ;;  %v1022_v27 = vsel %vm1014_vm5, %v1001_v59, %v2735_v14 }
  0xc1   : > { %v2743_v44 = vpop.permute.xlu0 %2742 }
  0xc2   : > { %v1061_v45 = vsel %vm1056_vm7, %v1040_v60, %v2749_v20  ;;  %v1062_v4 = vsel %vm1056_vm7, %v1041_v8, %v2750_v19  ;;  %v2745_v22 = vunpack.i.h.bf16 %v2743_v44  ;;  %v2744_v3 = vunpack.i.l.bf16 %v2743_v44 }
  0xc3   : > { %v2758_v10 = vpop.permute.xlu1 %2757  ;;  %v2650_v60 = vunpack.i.h.bf16 %v3841_v18  ;;  %v2649_v8 = vunpack.i.l.bf16 %v3841_v18 }
  0xc4   : > { %v2760_v55 = vunpack.i.h.bf16 %v2758_v10  ;;  %v2759_v9 = vunpack.i.l.bf16 %v2758_v10  ;;  %v1042_v40 = vsel %vm1035_vm6, %v1021_v15, %v2744_v3  ;;  %v1043_v35 = vsel %vm1035_vm6, %v1022_v27, %v2745_v22 }
  0xc5   : > { %v2753_v50 = vpop.permute.xlu0 %2752  ;;  %v981_v18 = vsel %vm972_vm3, %v3535_v42, %v2649_v8 }
  0xc6   : > { %v1082_v62 = vsel %vm1077_vm8, %v1061_v45, %v2759_v9  ;;  %v1083_v17 = vsel %vm1077_vm8, %v1062_v4, %v2760_v55  ;;  %v2755_v24 = vunpack.i.h.bf16 %v2753_v50  ;;  %v2754_v37 = vunpack.i.l.bf16 %v2753_v50 }
  0xc7   : > { %v2768_v16 = vpop.permute.xlu1 %2767 }
  0xc8   : > { %v2770_v46 = vunpack.i.h.bf16 %v2768_v16  ;;  %v2769_v47 = vunpack.i.l.bf16 %v2768_v16  ;;  %v1063_v61 = vsel %vm1056_vm7, %v1042_v40, %v2754_v37  ;;  %v1064_v51 = vsel %vm1056_vm7, %v1043_v35, %v2755_v24 }
  0xc9   : > { %v2763_v54 = vpop.permute.xlu0 %2762  ;;  %v982_v37 = vsel %vm972_vm3, %v3537_v43, %v2650_v60 }
  0xca   : > { %v1103_v25 = vsel %vm1098_vm9, %v1082_v62, %v2769_v47  ;;  %v1104_v53 = vsel %vm1098_vm9, %v1083_v17, %v2770_v46  ;;  %v2765_v26 = vunpack.i.h.bf16 %v2763_v54  ;;  %v2764_v28 = vunpack.i.l.bf16 %v2763_v54 }
  0xcb   : > { %v2778_v63 = vpop.permute.xlu1 %2777 }
  0xcc   : > { %v2780_v33 = vunpack.i.h.bf16 %v2778_v63  ;;  %v2779_v34 = vunpack.i.l.bf16 %v2778_v63  ;;  %v1084_v50 = vsel %vm1077_vm8, %v1063_v61, %v2764_v28  ;;  %v1085_v57 = vsel %vm1077_vm8, %v1064_v51, %v2765_v26 }
  0xcd   : > { %v2773_v52 = vpop.permute.xlu0 %2772 }
  0xce   : > { %v1124_v36 = vsel %vm1119_vm10, %v1103_v25, %v2779_v34  ;;  %v1125_v44 = vsel %vm1119_vm10, %v1104_v53, %v2780_v33  ;;  %v2775_v10 = vunpack.i.h.bf16 %v2773_v52  ;;  %v2774_v23 = vunpack.i.l.bf16 %v2773_v52 }
  0xcf   : > { %v1142_v32 = vpack.c.bf16 %v1125_v44, %v1124_v36  ;;  %v2788_v56 = vpop.permute.xlu1 %2787 }
  0xd0   : > { %v1105_v58 = vsel %vm1098_vm9, %v1084_v50, %v2774_v23  ;;  %v1106_v5 = vsel %vm1098_vm9, %v1085_v57, %v2775_v10  ;;  %v2790_v46 = vunpack.i.h.bf16 %v2788_v56  ;;  %v2789_v47 = vunpack.i.l.bf16 %v2788_v56 }
  0xd1   : > { %2520 = vmatprep.mubr.msk.bf16.mxu0 %vm1177_vm11, %v1142_v32  ;;  %v2783_v38 = vpop.permute.xlu0 %2782 }
  0xd2   : > { %v2785_v49 = vunpack.i.h.bf16 %v2783_v38  ;;  %v2784_v6 = vunpack.i.l.bf16 %v2783_v38  ;;  %v984_v4 = vsel %vm972_vm3, %v3697_v7, %v2790_v46  ;;  %v983_v22 = vsel %vm972_vm3, %v3689_v0, %v2789_v47 }
  0xd3   : > { %v2798_v12 = vpop.permute.xlu1 %2797 }
  0xd4   : > { %v1126_v19 = vsel %vm1119_vm10, %v1105_v58, %v2784_v6  ;;  %v1127_v20 = vsel %vm1119_vm10, %v1106_v5, %v2785_v49  ;;  %v2800_v14 = vunpack.i.h.bf16 %v2798_v12  ;;  %v2799_v15 = vunpack.i.l.bf16 %v2798_v12 }
  0xd5   : > { %v1143_v16 = vpack.c.bf16 %v1127_v20, %v1126_v19  ;;  %v2793_v11 = vpop.permute.xlu0 %2792 }
  0xd6   : > { %v2795_v3 = vunpack.i.h.bf16 %v2793_v11  ;;  %v2794_v63 = vunpack.i.l.bf16 %v2793_v11  ;;  %v1004_v25 = vsel %vm993_vm4, %v983_v22, %v2799_v15  ;;  %v1005_v7 = vsel %vm993_vm4, %v984_v4, %v2800_v14 }
  0xd7   : > { %v2808_v39 = vpop.permute.xlu1 %2807  ;;  %2521 = vmatmul.mubr.msk.bf16.gmra.mxu0 %vm1177_vm11, %v1143_v16 }
  0xd8   : > { %v2810_v62 = vunpack.i.h.bf16 %v2808_v39  ;;  %v2809_v17 = vunpack.i.l.bf16 %v2808_v39  ;;  %v1002_v0 = vsel %vm993_vm4, %v981_v18, %v2794_v63  ;;  %v1003_v52 = vsel %vm993_vm4, %v982_v37, %v2795_v3 }
  0xd9   : > { %v2803_v55 = vpop.permute.xlu0 %2802 }
  0xda   : > { %v2805_v34 = vunpack.i.h.bf16 %v2803_v55  ;;  %v2804_v24 = vunpack.i.l.bf16 %v2803_v55  ;;  %v1025_v36 = vsel %vm1014_vm5, %v1004_v25, %v2809_v17  ;;  %v1026_v44 = vsel %vm1014_vm5, %v1005_v7, %v2810_v62 }
  0xdb   : > { %v3975_v9 = vpop.permute.xlu1 %2817 }
  0xdc   : > { %v1023_v42 = vsel %vm1014_vm5, %v1002_v0, %v2804_v24  ;;  %v1024_v10 = vsel %vm1014_vm5, %v1003_v52, %v2805_v34  ;;  %v2820_v40 = vunpack.i.h.bf16 %v3975_v9  ;;  %v2819_v35 = vunpack.i.l.bf16 %v3975_v9 }
  0xdd   : > { %v2813_v59 = vpop.permute.xlu0 %2812 }
  0xde   : > { %v2815_v26 = vunpack.i.h.bf16 %v2813_v59  ;;  %v2814_v28 = vunpack.i.l.bf16 %v2813_v59  ;;  %v1047_v60 = vsel %vm1035_vm6, %v1026_v44, %v2820_v40 }
  0xdf   : > { %v3977_v31 = vpop.permute.xlu1 %2827 }
  0xe0   : > { %v1044_v50 = vsel %vm1035_vm6, %v1023_v42, %v2814_v28  ;;  %v1045_v57 = vsel %vm1035_vm6, %v1024_v10, %v2815_v26  ;;  %v2830_v49 = vunpack.i.h.bf16 %v3977_v31  ;;  %v2829_v6 = vunpack.i.l.bf16 %v3977_v31 }
  0xe1   : > { %v2823_v54 = vpop.permute.xlu0 %2822 }
  0xe2   : > { %v2825_v27 = vunpack.i.h.bf16 %v2823_v54  ;;  %v2824_v43 = vunpack.i.l.bf16 %v2823_v54  ;;  %v1046_v54 = vsel %vm1035_vm6, %v1025_v36, %v2819_v35 }
  0xe3   : > { %v2838_v45 = vpop.permute.xlu1 %2837  ;;  %v1067_v15 = vsel %vm1056_vm7, %v1046_v54, %v2829_v6 }
  0xe4   : > { %v1065_v58 = vsel %vm1056_vm7, %v1044_v50, %v2824_v43  ;;  %v1066_v5 = vsel %vm1056_vm7, %v1045_v57, %v2825_v27  ;;  %v2840_v12 = vunpack.i.h.bf16 %v2838_v45  ;;  %v2839_v19 = vunpack.i.l.bf16 %v2838_v45 }
  0xe5   : > { %v2833_v33 = vpop.permute.xlu0 %2832  ;;  %v1068_v45 = vsel %vm1056_vm7, %v1047_v60, %v2830_v49  ;;  %v3397_v27 = vmov 0.0  }
  0xe6   : > { %v2835_v23 = vunpack.i.h.bf16 %v2833_v33  ;;  %v2834_v56 = vunpack.i.l.bf16 %v2833_v33  ;;  %v1088_v3 = vsel %vm1077_vm8, %v1067_v15, %v2839_v19  ;;  %v1089_v63 = vsel %vm1077_vm8, %v1068_v45, %v2840_v12  ;;  %1349 = vst.msk [vmem:[#allocation2 + $0x18] sm:$0xff] %vm993_vm4, %v3397_v27  ;;  %1350 = vst.msk [vmem:[#allocation2 + $0x20] sm:$0xff] %vm993_vm4, %v3397_v27 }
  0xe7   : > { %v2848_v53 = vpop.permute.xlu1 %2847  ;;  %1345 = vst.msk [vmem:[#allocation2] sm:$0xff] %vm993_vm4, %v3397_v27  ;;  %1346 = vst.msk [vmem:[#allocation2 + $0x8] sm:$0xff] %vm993_vm4, %v3397_v27 }
  0xe8   : > { %v1086_v16 = vsel %vm1077_vm8, %v1065_v58, %v2834_v56  ;;  %v1087_v11 = vsel %vm1077_vm8, %v1066_v5, %v2835_v23  ;;  %v2850_v9 = vunpack.i.h.bf16 %v2848_v53  ;;  %v2849_v59 = vunpack.i.l.bf16 %v2848_v53  ;;  %1352 = vst.msk [vmem:[#allocation2 + $0x30] sm:$0xff] %vm993_vm4, %v3397_v27  ;;  %1353 = vst.msk [vmem:[#allocation2 + $0x38] sm:$0xff] %vm993_vm4, %v3397_v27 }
  0xe9   : > { %v2843_v32 = vpop.permute.xlu0 %2842  ;;  %1355 = vst.msk [vmem:[#allocation2 + $0x48] sm:$0xff] %vm993_vm4, %v3397_v27  ;;  %1356 = vst.msk [vmem:[#allocation2 + $0x50] sm:$0xff] %vm993_vm4, %v3397_v27 }
  0xea   : > { %v2845_v61 = vunpack.i.h.bf16 %v2843_v32  ;;  %v2844_v51 = vunpack.i.l.bf16 %v2843_v32  ;;  %v1109_v33 = vsel %vm1098_vm9, %v1088_v3, %v2849_v59  ;;  %v1110_v34 = vsel %vm1098_vm9, %v1089_v63, %v2850_v9  ;;  %1358 = vst.msk [vmem:[#allocation2 + $0x60] sm:$0xff] %vm993_vm4, %v3397_v27  ;;  %1359 = vst.msk [vmem:[#allocation2 + $0x68] sm:$0xff] %vm993_vm4, %v3397_v27 }
  0xeb   : > { %v3999_v38 = vpop.permute.xlu1 %2857  ;;  %1361 = vst.msk [vmem:[#allocation2 + $0x78] sm:$0xff] %vm993_vm4, %v3397_v27  ;;  %1362 = vst.msk [vmem:[#allocation2 + $0x80] sm:$0xff] %vm993_vm4, %v3397_v27 }
  0xec   : > { %v1107_v46 = vsel %vm1098_vm9, %v1086_v16, %v2844_v51  ;;  %v1108_v47 = vsel %vm1098_vm9, %v1087_v11, %v2845_v61  ;;  %1364 = vst.msk [vmem:[#allocation2 + $0x90] sm:$0xff] %vm993_vm4, %v3397_v27  ;;  %1365 = vst.msk [vmem:[#allocation2 + $0x98] sm:$0xff] %vm993_vm4, %v3397_v27  ;;  %v2860_v32 = vunpack.i.h.bf16 %v3999_v38  ;;  %v2859_v42 = vunpack.i.l.bf16 %v3999_v38 }
  0xed   : > { %v2853_v20 = vpop.permute.xlu0 %2852  ;;  %1367 = vst.msk [vmem:[#allocation2 + $0xa8] sm:$0xff] %vm993_vm4, %v3397_v27  ;;  %1368 = vst.msk [vmem:[#allocation2 + $0xb0] sm:$0xff] %vm993_vm4, %v3397_v27 }
  0xee   : > { %v2855_v39 = vunpack.i.h.bf16 %v2853_v20  ;;  %v2854_v55 = vunpack.i.l.bf16 %v2853_v20  ;;  %1370 = vst.msk [vmem:[#allocation2 + $0xc0] sm:$0xff] %vm993_vm4, %v3397_v27  ;;  %1371 = vst.msk [vmem:[#allocation2 + $0xc8] sm:$0xff] %vm993_vm4, %v3397_v27  ;;  %v986_v49 = vsel %vm972_vm3, %v3588_v21, %v2860_v32  ;;  %v985_v6 = vsel %vm972_vm3, %v3586_v13, %v2859_v42 }
  0xef   : > { %v2868_v31 = vpop.permute.xlu1 %2867  ;;  %1373 = vst.msk [vmem:[#allocation2 + $0xd8] sm:$0xff] %vm993_vm4, %v3397_v27  ;;  %1374 = vst.msk [vmem:[#allocation2 + $0xe0] sm:$0xff] %vm993_vm4, %v3397_v27 }
  0xf0   : > { %v1128_v8 = vsel %vm1119_vm10, %v1107_v46, %v2854_v55  ;;  %v1129_v14 = vsel %vm1119_vm10, %v1108_v47, %v2855_v39  ;;  %v2870_v36 = vunpack.i.h.bf16 %v2868_v31  ;;  %v2869_v44 = vunpack.i.l.bf16 %v2868_v31  ;;  %1351 = vst.msk [vmem:[#allocation2 + $0x28] sm:$0x3] %vm1347_vm12, %v3397_v27  ;;  %1348 = vst.msk [vmem:[#allocation2 + $0x10] sm:$0x3] %vm1347_vm12, %v3397_v27 }
  0xf1   : > { %v1144_v4 = vpack.c.bf16 %v1129_v14, %v1128_v8  ;;  %v2863_v22 = vpop.permute.xlu0 %2862  ;;  %1354 = vst.msk [vmem:[#allocation2 + $0x40] sm:$0x3] %vm1347_vm12, %v3397_v27  ;;  %1357 = vst.msk [vmem:[#allocation2 + $0x58] sm:$0x3] %vm1347_vm12, %v3397_v27 }
  0xf2   : > { %v2865_v62 = vunpack.i.h.bf16 %v2863_v22  ;;  %v2864_v17 = vunpack.i.l.bf16 %v2863_v22  ;;  %v988_v40 = vsel %vm972_vm3, %v3612_v48, %v2870_v36  ;;  %v987_v35 = vsel %vm972_vm3, %v3606_v41, %v2869_v44  ;;  %1360 = vst.msk [vmem:[#allocation2 + $0x70] sm:$0x3] %vm1347_vm12, %v3397_v27  ;;  %1363 = vst.msk [vmem:[#allocation2 + $0x88] sm:$0x3] %vm1347_vm12, %v3397_v27 }
  0xf3   : > { %v4021_v24 = vpop.permute.xlu1 %2877  ;;  %2524 = vmatprep.mubr.msk.bf16.mxu0 %vm1177_vm11, %v1144_v4  ;;  %1366 = vst.msk [vmem:[#allocation2 + $0xa0] sm:$0x3] %vm1347_vm12, %v3397_v27  ;;  %1369 = vst.msk [vmem:[#allocation2 + $0xb8] sm:$0x3] %vm1347_vm12, %v3397_v27 }
  0xf4   : > { %v1131_v37 = vsel %vm1119_vm10, %v1110_v34, %v2865_v62  ;;  %v1130_v18 = vsel %vm1119_vm10, %v1109_v33, %v2864_v17  ;;  %v2880_v10 = vunpack.i.h.bf16 %v4021_v24  ;;  %v2879_v23 = vunpack.i.l.bf16 %v4021_v24  ;;  %1372 = vst.msk [vmem:[#allocation2 + $0xd0] sm:$0x3] %vm1347_vm12, %v3397_v27  ;;  %1375 = vst.msk [vmem:[#allocation2 + $0xe8] sm:$0x3] %vm1347_vm12, %v3397_v27 }
  0xf5   : > { %v1145_v25 = vpack.c.bf16 %v1131_v37, %v1130_v18  ;;  %v4026_v7 = vpop.permute.xlu0 %2872 }
  0xf6   : > { %v2875_v61 = vunpack.i.h.bf16 %v4026_v7  ;;  %v2874_v51 = vunpack.i.l.bf16 %v4026_v7  ;;  %v1008_v58 = vsel %vm993_vm4, %v987_v35, %v2879_v23  ;;  %v1009_v5 = vsel %vm993_vm4, %v988_v40, %v2880_v10 }
  0xf7   : > { %v4028_v53 = vpop.permute.xlu1 %2887  ;;  %2525 = vmatmul.mubr.msk.bf16.gmra.mxu0 %vm1177_vm11, %v1145_v25 }
  0xf8   : > { %v2890_v41 = vunpack.i.h.bf16 %v4028_v53  ;;  %v2889_v48 = vunpack.i.l.bf16 %v4028_v53  ;;  %v1007_v19 = vsel %vm993_vm4, %v986_v49, %v2875_v61  ;;  %v1006_v20 = vsel %vm993_vm4, %v985_v6, %v2874_v51 }
  0xf9   : > { %v4031_v0 = vpop.permute.xlu0 %2882 }
  0xfa   : > { %v2885_v50 = vunpack.i.h.bf16 %v4031_v0  ;;  %v2884_v57 = vunpack.i.l.bf16 %v4031_v0  ;;  %v1029_v39 = vsel %vm1014_vm5, %v1008_v58, %v2889_v48  ;;  %v1030_v21 = vsel %vm1014_vm5, %v1009_v5, %v2890_v41 }
  0xfb   : > { %v4033_v52 = vpop.permute.xlu1 %2897 }
  0xfc   : > { %v1027_v59 = vsel %vm1014_vm5, %v1006_v20, %v2884_v57  ;;  %v1028_v46 = vsel %vm1014_vm5, %v1007_v19, %v2885_v50  ;;  %v2900_v54 = vunpack.i.h.bf16 %v4033_v52  ;;  %v2899_v60 = vunpack.i.l.bf16 %v4033_v52 }
  0xfd   : > { %v4035_v26 = vpop.permute.xlu0 %2892 }
  0xfe   : > { %v2895_v16 = vunpack.i.h.bf16 %v4035_v26  ;;  %v2894_v11 = vunpack.i.l.bf16 %v4035_v26  ;;  %v1051_v36 = vsel %vm1035_vm6, %v1030_v21, %v2900_v54 }
  0xff   : > { %v4037_v28 = vpop.permute.xlu1 %2907 }
 0x100   : > { %v1048_v45 = vsel %vm1035_vm6, %v1027_v59, %v2894_v11  ;;  %v1049_v4 = vsel %vm1035_vm6, %v1028_v46, %v2895_v16  ;;  %v2910_v22 = vunpack.i.h.bf16 %v4037_v28  ;;  %v2909_v3 = vunpack.i.l.bf16 %v4037_v28 }
 0x101   : > { %v2903_v43 = vpop.permute.xlu0 %2902  ;;  %v1050_v28 = vsel %vm1035_vm6, %v1029_v39, %v2899_v60 }
 0x102   : > { %v2905_v55 = vunpack.i.h.bf16 %v2903_v43  ;;  %v2904_v9 = vunpack.i.l.bf16 %v2903_v43  ;;  %v1071_v43 = vsel %vm1056_vm7, %v1050_v28, %v2909_v3  ;;  %v1072_v32 = vsel %vm1056_vm7, %v1051_v36, %v2910_v22 }
 0x103   : > { %v4063_v56 = vpop.permute.xlu1 %2917 }
 0x104   : > { %v1069_v63 = vsel %vm1056_vm7, %v1048_v45, %v2904_v9  ;;  %v1070_v62 = vsel %vm1056_vm7, %v1049_v4, %v2905_v55  ;;  %v2920_v17 = vunpack.i.h.bf16 %v4063_v56  ;;  %v2919_v33 = vunpack.i.l.bf16 %v4063_v56 }
 0x105   : > { %v2913_v38 = vpop.permute.xlu0 %2912 }
 0x106   : > { %v2915_v47 = vunpack.i.h.bf16 %v2913_v38  ;;  %v2914_v31 = vunpack.i.l.bf16 %v2913_v38  ;;  %v1092_v23 = vsel %vm1077_vm8, %v1071_v43, %v2919_v33  ;;  %v1093_v56 = vsel %vm1077_vm8, %v1072_v32, %v2920_v17 }
 0x107   : > { %v2928_v12 = vpop.permute.xlu1 %2927 }
 0x108   : > { %v1090_v24 = vsel %vm1077_vm8, %v1069_v63, %v2914_v31  ;;  %v1091_v37 = vsel %vm1077_vm8, %v1070_v62, %v2915_v47  ;;  %v2930_v7 = vunpack.i.h.bf16 %v2928_v12  ;;  %v2929_v53 = vunpack.i.l.bf16 %v2928_v12 }
 0x109   : > { %v2923_v13 = vpop.permute.xlu0 %2922 }
 0x10a   : > { %v2925_v8 = vunpack.i.h.bf16 %v2923_v13  ;;  %v2924_v14 = vunpack.i.l.bf16 %v2923_v13  ;;  %v1113_v61 = vsel %vm1098_vm9, %v1092_v23, %v2929_v53  ;;  %v1114_v51 = vsel %vm1098_vm9, %v1093_v56, %v2930_v7 }
 0x10b   : > { %v4101_v15 = vpop.permute.xlu1 %2937 }
 0x10c   : > { %v1111_v0 = vsel %vm1098_vm9, %v1090_v24, %v2924_v14  ;;  %v1112_v52 = vsel %vm1098_vm9, %v1091_v37, %v2925_v8  ;;  %v2940_v16 = vunpack.i.h.bf16 %v4101_v15  ;;  %v2939_v11 = vunpack.i.l.bf16 %v4101_v15 }
 0x10d   : > { %v2933_v34 = vpop.permute.xlu0 %2932 }
 0x10e   : > { %v2935_v18 = vunpack.i.h.bf16 %v2933_v34  ;;  %v2934_v25 = vunpack.i.l.bf16 %v2933_v34  ;;  %v990_v14 = vsel %vm972_vm3, %v3634_v2, %v2940_v16  ;;  %v989_v15 = vsel %vm972_vm3, %v3632_v1, %v2939_v11 }
 0x10f   : > { %v2948_v26 = vpop.permute.xlu1 %2947 }
 0x110   : > { %v1132_v44 = vsel %vm1119_vm10, %v1111_v0, %v2934_v25  ;;  %v1133_v27 = vsel %vm1119_vm10, %v1112_v52, %v2935_v18  ;;  %v2950_v12 = vunpack.i.h.bf16 %v2948_v26  ;;  %v2949_v19 = vunpack.i.l.bf16 %v2948_v26 }
 0x111   : > { %v1146_v42 = vpack.c.bf16 %v1133_v27, %v1132_v44  ;;  %v2943_v10 = vpop.permute.xlu0 %2942 }
 0x112   : > { %v2945_v40 = vunpack.i.h.bf16 %v2943_v10  ;;  %v2944_v35 = vunpack.i.l.bf16 %v2943_v10  ;;  %v992_v59 = vsel %vm972_vm3, %v3658_v30, %v2950_v12  ;;  %v991_v46 = vsel %vm972_vm3, %v3654_v29, %v2949_v19 }
 0x113   : > { %v2958_v41 = vpop.permute.xlu1 %2957  ;;  %2528 = vmatprep.mubr.msk.bf16.mxu0 %vm1177_vm11, %v1146_v42 }
 0x114   : > { %v1135_v48 = vsel %vm1119_vm10, %v1114_v51, %v2945_v40  ;;  %v1134_v38 = vsel %vm1119_vm10, %v1113_v61, %v2944_v35  ;;  %v2960_v39 = vunpack.i.h.bf16 %v2958_v41  ;;  %v2959_v21 = vunpack.i.l.bf16 %v2958_v41 }
 0x115   : > { %v1147_v50 = vpack.c.bf16 %v1135_v48, %v1134_v38  ;;  %v2953_v57 = vpop.permute.xlu0 %2952 }
 0x116   : > { %v2955_v55 = vunpack.i.h.bf16 %v2953_v57  ;;  %v2954_v9 = vunpack.i.l.bf16 %v2953_v57  ;;  %v1012_v22 = vsel %vm993_vm4, %v991_v46, %v2959_v21  ;;  %v1013_v30 = vsel %vm993_vm4, %v992_v59, %v2960_v39  ;;  %v4172_v59 = vld [vmem:[%s4654_s3] ss:$0 sm:$0xff] }
 0x117   : > { %v2968_v49 = vpop.permute.xlu1 %2967  ;;  %2529 = vmatmul.mubr.msk.bf16.gmra.mxu0 %vm1177_vm11, %v1147_v50 }
 0x118   : > { %v2970_v47 = vunpack.i.h.bf16 %v2968_v49  ;;  %v2969_v31 = vunpack.i.l.bf16 %v2968_v49  ;;  %v1011_v3 = vsel %vm993_vm4, %v990_v14, %v2955_v55  ;;  %v1010_v29 = vsel %vm993_vm4, %v989_v15, %v2954_v9 }
 0x119   : > { %v2963_v6 = vpop.permute.xlu0 %2962 }
 0x11a   : > { %v2965_v54 = vunpack.i.h.bf16 %v2963_v6  ;;  %v2964_v60 = vunpack.i.l.bf16 %v2963_v6  ;;  %v1033_v62 = vsel %vm1014_vm5, %v1012_v22, %v2969_v31  ;;  %v1034_v17 = vsel %vm1014_vm5, %v1013_v30, %v2970_v47 }
 0x11b   : > { %v2978_v58 = vpop.permute.xlu1 %2977 }
 0x11c   : > { %v2980_v45 = vunpack.i.h.bf16 %v2978_v58  ;;  %v2979_v4 = vunpack.i.l.bf16 %v2978_v58  ;;  %v1031_v34 = vsel %vm1014_vm5, %v1010_v29, %v2964_v60  ;;  %v1032_v1 = vsel %vm1014_vm5, %v1011_v3, %v2965_v54 }
 0x11d   : > { %v2973_v5 = vpop.permute.xlu0 %2972 }
 0x11e   : > { %v2975_v33 = vunpack.i.h.bf16 %v2973_v5  ;;  %v2974_v2 = vunpack.i.l.bf16 %v2973_v5  ;;  %v1054_v25 = vsel %vm1035_vm6, %v1033_v62, %v2979_v4  ;;  %v1055_v7 = vsel %vm1035_vm6, %v1034_v17, %v2980_v45 }
 0x11f   : > { %v2988_v20 = vpop.permute.xlu1 %2987 }
 0x120   : > { %v2990_v24 = vunpack.i.h.bf16 %v2988_v20  ;;  %v2989_v37 = vunpack.i.l.bf16 %v2988_v20  ;;  %v1052_v27 = vsel %vm1035_vm6, %v1031_v34, %v2974_v2  ;;  %v1053_v43 = vsel %vm1035_vm6, %v1032_v1, %v2975_v33 }
 0x121   : > { %v2983_v13 = vpop.permute.xlu0 %2982 }
 0x122   : > { %v2985_v53 = vunpack.i.h.bf16 %v2983_v13  ;;  %v2984_v0 = vunpack.i.l.bf16 %v2983_v13  ;;  %v1075_v10 = vsel %vm1056_vm7, %v1054_v25, %v2989_v37  ;;  %v1076_v23 = vsel %vm1056_vm7, %v1055_v7, %v2990_v24 }
 0x123   : > { %v2998_v8 = vpop.permute.xlu1 %2997 }
 0x124   : > { %v3000_v52 = vunpack.i.h.bf16 %v2998_v8  ;;  %v2999_v26 = vunpack.i.l.bf16 %v2998_v8  ;;  %v1073_v61 = vsel %vm1056_vm7, %v1052_v27, %v2984_v0  ;;  %v1074_v51 = vsel %vm1056_vm7, %v1053_v43, %v2985_v53 }
 0x125   : > { %v2993_v63 = vpop.permute.xlu0 %2992 }
 0x126   : > { %v2995_v28 = vunpack.i.h.bf16 %v2993_v63  ;;  %v2994_v36 = vunpack.i.l.bf16 %v2993_v63  ;;  %v1096_v38 = vsel %vm1077_vm8, %v1075_v10, %v2999_v26  ;;  %v1097_v50 = vsel %vm1077_vm8, %v1076_v23, %v3000_v52 }
 0x127   : > { %v3008_v18 = vpop.permute.xlu1 %3007 }
 0x128   : > { %v3010_v32 = vunpack.i.h.bf16 %v3008_v18  ;;  %v3009_v42 = vunpack.i.l.bf16 %v3008_v18  ;;  %v1094_v57 = vsel %vm1077_vm8, %v1073_v61, %v2994_v36  ;;  %v1095_v49 = vsel %vm1077_vm8, %v1074_v51, %v2995_v28 }
 0x129   : > { %v3003_v44 = vpop.permute.xlu0 %3002 }
 0x12a   : > { %v3005_v56 = vunpack.i.h.bf16 %v3003_v44  ;;  %v3004_v40 = vunpack.i.l.bf16 %v3003_v44  ;;  %v1117_v58 = vsel %vm1098_vm9, %v1096_v38, %v3009_v42  ;;  %v1118_v5 = vsel %vm1098_vm9, %v1097_v50, %v3010_v32 }
 0x12b   : > { %v3018_v35 = vpop.permute.xlu1 %3017 }
 0x12c   : > { %v3020_v41 = vunpack.i.h.bf16 %v3018_v35  ;;  %v3019_v48 = vunpack.i.l.bf16 %v3018_v35  ;;  %v1115_v20 = vsel %vm1098_vm9, %v1094_v57, %v3004_v40  ;;  %v1116_v16 = vsel %vm1098_vm9, %v1095_v49, %v3005_v56 }
 0x12d   : > { %v3013_v6 = vpop.permute.xlu0 %3012 }
 0x12e   : > { %v3015_v12 = vunpack.i.h.bf16 %v3013_v6  ;;  %v3014_v19 = vunpack.i.l.bf16 %v3013_v6  ;;  %v1138_v11 = vsel %vm1119_vm10, %v1117_v58, %v3019_v48  ;;  %v1139_v39 = vsel %vm1119_vm10, %v1118_v5, %v3020_v41 }
 0x12f   : > { %v1149_v13 = vpack.c.bf16 %v1139_v39, %v1138_v11 }
 0x130   : > { %v1136_v21 = vsel %vm1119_vm10, %v1115_v20, %v3014_v19  ;;  %v1137_v55 = vsel %vm1119_vm10, %v1116_v16, %v3015_v12 }
 0x131   : > { %v1148_v9 = vpack.c.bf16 %v1137_v55, %v1136_v21 }
 0x133   : > { %2532 = vmatprep.mubr.msk.bf16.mxu0 %vm1177_vm11, %v1148_v9 }
 0x134   : > { %2533 = vmatmul.mubr.msk.bf16.gmra.mxu0 %vm1177_vm11, %v1149_v13 }
 0x17b   : > { %v2518_v46 = vpop.f32.mrf.mxu0 }
 0x17c   : > { %v1255_v47 = vadd.f32 %v2518_v46, %v4172_v59 }
 0x17d   : > { %v1246_v31 = vpop.f32.mrf.mxu0 }
 0x17e   : > { %v1327_v54 = vmax.f32 %v1255_v47, 0.0  ;;  %v1247_v60 = vadd.f32 %v4172_v59, %v1246_v31 }
 0x17f   : > { %v2519_v8 = vpop.f32.mrf.mxu0 }
 0x180   : > { %1378 = vst.msk [vmem:[#allocation2 + $0x19] sm:$0xff] %vm993_vm4, %v1327_v54  ;;  %v1325_v14 = vmax.f32 %v1247_v60, 0.0  ;;  %v1258_v15 = vadd.f32 %v2519_v8, %v4172_v59 }
 0x181   : > { %v1249_v45 = vpop.f32.mrf.mxu0 }
 0x182   : > { %1376 = vst.msk [vmem:[#allocation2 + $0x1] sm:$0xff] %vm993_vm4, %v1325_v14  ;;  %v1328_v4 = vmax.f32 %v1258_v15, 0.0  ;;  %v1250_v22 = vadd.f32 %v4172_v59, %v1249_v45 }
 0x184   : > { %1379 = vst.msk [vmem:[#allocation2 + $0x21] sm:$0xff] %vm993_vm4, %v1328_v4  ;;  %v1326_v30 = vmax.f32 %v1250_v22, 0.0 }
 0x186   : > { %1377 = vst.msk [vmem:[#allocation2 + $0x9] sm:$0xff] %vm993_vm4, %v1326_v30 }
 0x197   : > { %v2522_v3 = vpop.f32.mrf.mxu0 }
 0x198   : > { %v1271_v29 = vadd.f32 %v2522_v3, %v4172_v59 }
 0x199   : > { %v1262_v63 = vpop.f32.mrf.mxu0 }
 0x19a   : > { %v1331_v62 = vmax.f32 %v1271_v29, 0.0  ;;  %v1263_v17 = vadd.f32 %v4172_v59, %v1262_v63 }
 0x19b   : > { %v2523_v33 = vpop.f32.mrf.mxu0 }
 0x19c   : > { %1382 = vst.msk [vmem:[#allocation2 + $0x49] sm:$0xff] %vm993_vm4, %v1331_v62  ;;  %v1329_v2 = vmax.f32 %v1263_v17, 0.0  ;;  %v1274_v34 = vadd.f32 %v2523_v33, %v4172_v59 }
 0x19d   : > { %v1265_v1 = vpop.f32.mrf.mxu0 }
 0x19e   : > { %1380 = vst.msk [vmem:[#allocation2 + $0x31] sm:$0xff] %vm993_vm4, %v1329_v2  ;;  %v1332_v24 = vmax.f32 %v1274_v34, 0.0  ;;  %v1266_v37 = vadd.f32 %v4172_v59, %v1265_v1 }
 0x1a0   : > { %1383 = vst.msk [vmem:[#allocation2 + $0x51] sm:$0xff] %vm993_vm4, %v1332_v24  ;;  %v1330_v18 = vmax.f32 %v1266_v37, 0.0 }
 0x1a2   : > { %1381 = vst.msk [vmem:[#allocation2 + $0x39] sm:$0xff] %vm993_vm4, %v1330_v18 }
 0x1b7   : > { %v2526_v25 = vpop.f32.mrf.mxu0 }
 0x1b8   : > { %v1287_v7 = vadd.f32 %v2526_v25, %v4172_v59 }
 0x1b9   : > { %v1278_v53 = vpop.f32.mrf.mxu0 }
 0x1ba   : > { %v1335_v0 = vmax.f32 %v1287_v7, 0.0  ;;  %v1279_v52 = vadd.f32 %v4172_v59, %v1278_v53 }
 0x1bb   : > { %v2527_v26 = vpop.f32.mrf.mxu0 }
 0x1bc   : > { %1386 = vst.msk [vmem:[#allocation2 + $0x79] sm:$0xff] %vm993_vm4, %v1335_v0  ;;  %v1333_v28 = vmax.f32 %v1279_v52, 0.0  ;;  %v1290_v36 = vadd.f32 %v2527_v26, %v4172_v59 }
 0x1bd   : > { %v1281_v44 = vpop.f32.mrf.mxu0 }
 0x1be   : > { %1384 = vst.msk [vmem:[#allocation2 + $0x61] sm:$0xff] %vm993_vm4, %v1333_v28  ;;  %v1336_v27 = vmax.f32 %v1290_v36, 0.0  ;;  %v1282_v43 = vadd.f32 %v4172_v59, %v1281_v44 }
 0x1c0   : > { %1387 = vst.msk [vmem:[#allocation2 + $0x81] sm:$0xff] %vm993_vm4, %v1336_v27  ;;  %v1334_v32 = vmax.f32 %v1282_v43, 0.0 }
 0x1c2   : > { %1385 = vst.msk [vmem:[#allocation2 + $0x69] sm:$0xff] %vm993_vm4, %v1334_v32 }
 0x1d7   : > { %v2530_v42 = vpop.f32.mrf.mxu0 }
 0x1d8   : > { %v1303_v10 = vadd.f32 %v2530_v42, %v4172_v59 }
 0x1d9   : > { %v1294_v23 = vpop.f32.mrf.mxu0 }
 0x1da   : > { %v1339_v56 = vmax.f32 %v1303_v10, 0.0  ;;  %v1295_v40 = vadd.f32 %v4172_v59, %v1294_v23 }
 0x1db   : > { %v2531_v35 = vpop.f32.mrf.mxu0 }
 0x1dc   : > { %1390 = vst.msk [vmem:[#allocation2 + $0xa9] sm:$0xff] %vm993_vm4, %v1339_v56  ;;  %v1337_v61 = vmax.f32 %v1295_v40, 0.0  ;;  %v1306_v51 = vadd.f32 %v2531_v35, %v4172_v59 }
 0x1dd   : > { %v1297_v41 = vpop.f32.mrf.mxu0 }
 0x1de   : > { %1388 = vst.msk [vmem:[#allocation2 + $0x91] sm:$0xff] %vm993_vm4, %v1337_v61  ;;  %v1340_v48 = vmax.f32 %v1306_v51, 0.0  ;;  %v1298_v38 = vadd.f32 %v4172_v59, %v1297_v41 }
 0x1e0   : > { %1391 = vst.msk [vmem:[#allocation2 + $0xb1] sm:$0xff] %vm993_vm4, %v1340_v48  ;;  %v1338_v50 = vmax.f32 %v1298_v38, 0.0 }
 0x1e2   : > { %1389 = vst.msk [vmem:[#allocation2 + $0x99] sm:$0xff] %vm993_vm4, %v1338_v50 }
 0x1f4   : > { %v2534_v57 = vpop.f32.mrf.mxu0 }
 0x1f5   : > { %v1319_v49 = vadd.f32 %v2534_v57, %v4172_v59 }
 0x1f6   : > { %v1310_v6 = vpop.f32.mrf.mxu0 }
 0x1f7   : > { %v1343_v58 = vmax.f32 %v1319_v49, 0.0  ;;  %v1311_v5 = vadd.f32 %v4172_v59, %v1310_v6 }
 0x1f8   : > { %v2535_v12 = vpop.f32.mrf.mxu0 }
 0x1f9   : > { %1394 = vst.msk [vmem:[#allocation2 + $0xd9] sm:$0xff] %vm993_vm4, %v1343_v58  ;;  %v1341_v19 = vmax.f32 %v1311_v5, 0.0  ;;  %v1322_v20 = vadd.f32 %v2535_v12, %v4172_v59 }
 0x1fa   : > { %v1313_v16 = vpop.f32.mrf.mxu0 }
 0x1fb   : > { %1392 = vst.msk [vmem:[#allocation2 + $0xc1] sm:$0xff] %vm993_vm4, %v1341_v19  ;;  %v1344_v11 = vmax.f32 %v1322_v20, 0.0  ;;  %v1314_v39 = vadd.f32 %v4172_v59, %v1313_v16  ;;  %1399 = sbr.rel (%p2437_p7) target bundleno = 515 (0x203), region = 44 }
 0x1fd   : > { %1395 = vst.msk [vmem:[#allocation2 + $0xe1] sm:$0xff] %vm993_vm4, %v1344_v11  ;;  %v1342_v21 = vmax.f32 %v1314_v39, 0.0 }
 0x1ff   : > { %1393 = vst.msk [vmem:[#allocation2 + $0xc9] sm:$0xff] %vm993_vm4, %v1342_v21 }
 0x200   : > { %v3398_v55 = vmov 0.0  }
 0x201   : > { %1400 = vst.msk [vmem:[#allocation2] sm:$0xff] %vm993_vm4, %v3398_v55  ;;  %1401 = vst.msk [vmem:[#allocation2 + $0x8] sm:$0xff] %vm993_vm4, %v3398_v55 }
 0x202   : > { %1402 = vst.msk [vmem:[#allocation2 + $0x10] sm:$0x3] %vm1347_vm12, %v3398_v55 }
 0x203 PF: > { %p2438_p8 = scmp.ne.s32.totalorder %s3371_s18, 1 }
 0x205   : > { %1406 = sbr.rel (%p2438_p8) target bundleno = 525 (0x20d), region = 48 }
 0x20a   : > { %v3399_v9 = vmov 0.0  }
 0x20b   : > { %1408 = vst.msk [vmem:[#allocation2 + $0xd8] sm:$0xff] %vm993_vm4, %v3399_v9  ;;  %1409 = vst.msk [vmem:[#allocation2 + $0xe0] sm:$0xff] %vm993_vm4, %v3399_v9 }
 0x20c   : > { %1410 = vst.msk [vmem:[#allocation2 + $0xe8] sm:$0x3] %vm1347_vm12, %v3399_v9 }
 0x20d PF: > { %v4222_v13 = vld [vmem:[#allocation2] sm:$0xff]  ;;  %v4224_v59 = vld [vmem:[#allocation2 + $0x8] sm:$0xff]  ;;  %v1413_v46 = vld [vmem:[#allocation2 + $0x10] sm:$0x3]  ;;  %s3400_s18 = smov 40   ;;  %s3401_s13 = smov 48  }
 0x20e   : > { %v1505_v47 = vrot.slane %v4222_v13, 2  ;;  %v1506_v31 = vrot.slane %v4224_v59, 2  ;;  %v1508_v54 = vrot.slane %v1413_v46, 2  ;;  %v1465_v60 = vrot.slane %v4222_v13, 1  ;;  %v4229_v8 = vld [vmem:[#allocation2 + $0x18] sm:$0xff]  ;;  %v4231_v14 = vld [vmem:[#allocation2 + $0x20] sm:$0xff] }
 0x20f   : > { %v1466_v15 = vrot.slane %v4224_v59, 1  ;;  %v1468_v45 = vrot.slane %v1413_v46, 1  ;;  %v1416_v4 = vld [vmem:[#allocation2 + $0x28] sm:$0x3]  ;;  %v1510_v22 = vrot.slane %v4229_v8, 2  ;;  %v1511_v30 = vrot.slane %v4231_v14, 2 }
 0x210   : > { %v1507_v3 = vsel %vm415_vm1, %v1505_v47, %v1506_v31  ;;  %v1509_v29 = vsel %vm415_vm1, %v1506_v31, %v1508_v54  ;;  %v1513_v63 = vrot.slane %v1416_v4, 2  ;;  %v1470_v62 = vrot.slane %v4229_v8, 1  ;;  %v4242_v1 = vld [vmem:[#allocation2 + $0x30] sm:$0xff]  ;;  %v4244_v24 = vld [vmem:[#allocation2 + $0x38] sm:$0xff]  ;;  %v1419_v53 = vld [vmem:[#allocation2 + $0x40] sm:$0x3] }
 0x211   : > { %v3039_v17 = vpack.i.bf16 %v1509_v29, %v1507_v3  ;;  %v1467_v33 = vsel %vm364_vm0, %v1465_v60, %v1466_v15  ;;  %v1469_v2 = vsel %vm364_vm0, %v1466_v15, %v1468_v45  ;;  %v1512_v34 = vsel %vm415_vm1, %v1510_v22, %v1511_v30  ;;  %v4268_v41 = vld [vmem:[#allocation2 + $0x48] sm:$0xff]  ;;  %v4270_v48 = vld [vmem:[#allocation2 + $0x50] sm:$0xff]  ;;  %v1422_v38 = vld [vmem:[#allocation2 + $0x58] sm:$0x3]  ;;  %s3402_s14 = smov 56   ;;  %s3403_s15 = smov 64  }
 0x212   : > { %v3024_v37 = vpack.i.bf16 %v1469_v2, %v1467_v33  ;;  %v1514_v18 = vsel %vm415_vm1, %v1511_v30, %v1513_v63  ;;  %v1471_v25 = vrot.slane %v4231_v14, 1  ;;  %v1473_v7 = vrot.slane %v1416_v4, 1  ;;  %v4292_v9 = vld [vmem:[#allocation2 + $0x60] sm:$0xff]  ;;  %v4294_v46 = vld [vmem:[#allocation2 + $0x68] sm:$0xff]  ;;  %v1425_v47 = vld [vmem:[#allocation2 + $0x70] sm:$0x3] }
 0x213   : > { %3040 = vrot.lane.b32.xlu1 %v3039_v17, %s3392_s19  ;;  %v3044_v0 = vpack.i.bf16 %v1514_v18, %v1512_v34  ;;  %v1475_v28 = vrot.slane %v4242_v1, 1  ;;  %v1476_v36 = vrot.slane %v4244_v24, 1  ;;  %v1478_v27 = vrot.slane %v1419_v53, 1  ;;  %v3344_v31 = vld [vmem:[%s4653_s2 + $0x20] ss:$0 sps:$4 sm:$0xff]   ;;  %v3345_v45 = vld [vmem:[%s4653_s2 + $0x18] sm:$0xff]  }
 0x214   : > { %3025 = vrot.lane.b32.xlu0 %v3024_v37, %s3391_s17  ;;  %v1472_v52 = vsel %vm364_vm0, %v1470_v62, %v1471_v25  ;;  %v1474_v26 = vsel %vm364_vm0, %v1471_v25, %v1473_v7  ;;  %v3049_v43 = vpack.i.bf16 %v4244_v24, %v4242_v1  ;;  %v3034_v32 = vpack.i.bf16 %v4231_v14, %v4229_v8  ;;  %v3346_v17 = vld [vmem:[%s4653_s2 + $0x10] sm:$0xff]   ;;  %v4321_v37 = vld [vmem:[#allocation2 + $0x78] sm:$0xff]  ;;  %v4323_v18 = vld [vmem:[#allocation2 + $0x80] sm:$0xff] }
 0x215   : > { %v3029_v44 = vpack.i.bf16 %v1474_v26, %v1472_v52  ;;  %v1518_v42 = vrot.slane %v1419_v53, 2  ;;  %v1477_v10 = vsel %vm364_vm0, %v1475_v28, %v1476_v36  ;;  %v1479_v23 = vsel %vm364_vm0, %v1476_v36, %v1478_v27  ;;  %v1428_v25 = vld [vmem:[#allocation2 + $0x88] sm:$0x3]  ;;  %v3348_v28 = vld [vmem:[%s4653_s2] sm:$0xff]  }
 0x216   : > { %v1515_v56 = vrot.slane %v4242_v1, 2  ;;  %v1516_v40 = vrot.slane %v4244_v24, 2  ;;  %v3059_v35 = vpack.i.bf16 %v1479_v23, %v1477_v10  ;;  %v1480_v57 = vrot.slane %v4268_v41, 1  ;;  %v3347_v7 = vld [vmem:[%s4653_s2 + $0x8] sm:$0xff]  }
 0x217   : > { %3045 = vrot.lane.b32.xlu1 %v3044_v0, %s3392_s19  ;;  %v1481_v49 = vrot.slane %v4270_v48, 1  ;;  %v1483_v6 = vrot.slane %v1422_v38, 1  ;;  %v3079_v58 = vpack.i.bf16 %v4270_v48, %v4268_v41  ;;  %v1520_v20 = vrot.slane %v4268_v41, 2 }
 0x218   : > { %3030 = vrot.lane.b32.xlu0 %v3029_v44, %s3391_s17  ;;  %v1517_v61 = vsel %vm415_vm1, %v1515_v56, %v1516_v40  ;;  %v1519_v51 = vsel %vm415_vm1, %v1516_v40, %v1518_v42  ;;  %v1521_v16 = vrot.slane %v4270_v48, 2  ;;  %v1523_v11 = vrot.slane %v1422_v38, 2 }
 0x219   : > { %v3069_v50 = vpack.i.bf16 %v1519_v51, %v1517_v61  ;;  %v1482_v5 = vsel %vm364_vm0, %v1480_v57, %v1481_v49  ;;  %v1484_v12 = vsel %vm364_vm0, %v1481_v49, %v1483_v6  ;;  %v1485_v54 = vrot.slane %v4292_v9, 1  ;;  %v4353_v61 = vld [vmem:[#allocation2 + $0x98] sm:$0xff]  ;;  %v1431_v51 = vld [vmem:[#allocation2 + $0xa0] sm:$0x3] }
 0x21a   : > { %v3089_v19 = vpack.i.bf16 %v1484_v12, %v1482_v5  ;;  %v1522_v39 = vsel %vm415_vm1, %v1520_v20, %v1521_v16  ;;  %v1524_v21 = vsel %vm415_vm1, %v1521_v16, %v1523_v11  ;;  %v1486_v60 = vrot.slane %v4294_v46, 1 }
 0x21b   : > { %3050 = vrot.lane.b32.xlu1 %v3049_v43, %s3394_s26  ;;  %v3104_v55 = vpack.i.bf16 %v1524_v21, %v1522_v39  ;;  %v1488_v15 = vrot.slane %v1425_v47, 1  ;;  %vm2163_vm13 = vcmask 1043456   ;;  %v3129_v4 = vpack.i.bf16 %v4294_v46, %v4292_v9  ;;  %v4371_v39 = vld [vmem:[#allocation2 + $0xa8] sm:$0xff]  ;;  %v4373_v21 = vld [vmem:[#allocation2 + $0xb0] sm:$0xff] }
 0x21c   : > { %3035 = vrot.lane.b32.xlu0 %v3034_v32, %s3394_s26  ;;  %v1528_v22 = vrot.slane %v1425_v47, 2  ;;  %2563 = vmatprep.subr.msk.bf16.mxu1 %vm2163_vm13, %v3344_v31  ;;  %v2165_v30 = vsel %vm2163_vm13, %v3344_v31, 0  ;;  %v1487_v3 = vsel %vm364_vm0, %v1485_v54, %v1486_v60  ;;  %v1525_v63 = vrot.slane %v4292_v9, 2 }
 0x21d   : > { %v1489_v29 = vsel %vm364_vm0, %v1486_v60, %v1488_v15  ;;  %v1526_v62 = vrot.slane %v4294_v46, 2  ;;  %2537 = vmatpush3.bf16.msra.mxu1 %v2165_v30  ;;  %v1491_v52 = vrot.slane %v4323_v18, 1  ;;  %v1493_v26 = vrot.slane %v1428_v25, 1 }
 0x21e   : > { %2538 = vmatprep.subr.bf16.mxu1 %v3345_v45  ;;  %v3139_v33 = vpack.i.bf16 %v1489_v29, %v1487_v3  ;;  %v3159_v36 = vpack.i.bf16 %v4323_v18, %v4321_v37  ;;  %v1530_v32 = vrot.slane %v4321_v37, 2  ;;  %v1531_v42 = vrot.slane %v4323_v18, 2 }
 0x21f   : > { %3060 = vrot.lane.b32.xlu1 %v3059_v35, %s3396_s28  ;;  %v1527_v2 = vsel %vm415_vm1, %v1525_v63, %v1526_v62  ;;  %v1529_v34 = vsel %vm415_vm1, %v1526_v62, %v1528_v22  ;;  %v1494_v27 = vsel %vm364_vm0, %v1491_v52, %v1493_v26  ;;  %v1533_v10 = vrot.slane %v1428_v25, 2 }
 0x220   : > { %3055 = vrot.lane.b32.xlu0 %v3029_v44, %s3396_s28  ;;  %v3149_v53 = vpack.i.bf16 %v1529_v34, %v1527_v2  ;;  %v1532_v23 = vsel %vm415_vm1, %v1530_v32, %v1531_v42  ;;  %v1498_v57 = vrot.slane %v1431_v51, 1  ;;  %v1538_v6 = vrot.slane %v1431_v51, 2  ;;  %v1436_v2 = vld [vmem:[#allocation2 + $0xc8] sm:$0xff]  ;;  %v1437_v34 = vld [vmem:[#allocation2 + $0xd0] sm:$0x3] }
 0x221   : > { %2539 = vmatpush3.bf16.msra.mxu1 %v3345_v45  ;;  %v1534_v56 = vsel %vm415_vm1, %v1531_v42, %v1533_v10  ;;  %v1500_v31 = vrot.slane %v4371_v39, 1  ;;  %v1501_v54 = vrot.slane %v4373_v21, 1  ;;  %v3239_v15 = vpack.i.bf16 %v4373_v21, %v4371_v39  ;;  %v1438_v42 = vld [vmem:[#allocation2 + $0xd8] sm:$0xff]  ;;  %v1439_v10 = vld [vmem:[#allocation2 + $0xe0] sm:$0xff] }
 0x222   : > { %2540 = vmatprep.subr.bf16.mxu1 %v3346_v17  ;;  %v3184_v40 = vpack.i.bf16 %v1534_v56, %v1532_v23  ;;  %v1540_v30 = vrot.slane %v4371_v39, 2  ;;  %v1541_v3 = vrot.slane %v4373_v21, 2  ;;  %v1440_v23 = vld [vmem:[#allocation2 + $0xe8] sm:$0x3]  ;;  %v1562_v51 = vrot.slane %v1439_v10, 1 }
 0x223   : > { %3070 = vrot.lane.b32.xlu1 %v3069_v50, %s3400_s18  ;;  %v1502_v45 = vsel %vm364_vm0, %v1500_v31, %v1501_v54  ;;  %vm2019_vm14 = vcmask 326656   ;;  %vm2036_vm15 = vcmask 392192   ;;  %vm2138_vm2 = vcmask 588800  }
 0x224   : > { %3065 = vrot.lane.b32.xlu0 %v3044_v0, %s3400_s18  ;;  %v1490_v0 = vrot.slane %v4321_v37, 1  ;;  %v1542_v63 = vsel %vm415_vm1, %v1540_v30, %v1541_v3 }
 0x225   : > { %2541 = vmatpush3.bf16.msra.mxu1 %v3346_v17 }
 0x226   : > { %2542 = vmatprep.subr.bf16.mxu1 %v3347_v7  ;;  %v1492_v44 = vsel %vm364_vm0, %v1490_v0, %v1491_v52  ;;  %v1556_v52 = vrot.slane %v1437_v34, 2 }
 0x227   : > { %3080 = vrot.lane.b32.xlu1 %v3079_v58, %s3401_s13 }
 0x228   : > { %3075 = vrot.lane.b32.xlu0 %v3049_v43, %s3401_s13  ;;  %v3169_v43 = vpack.i.bf16 %v1494_v27, %v1492_v44  ;;  %v1554_v44 = vrot.slane %v1436_v2, 2 }
 0x229   : > { %2543 = vmatpush3.bf16.msra.mxu1 %v3347_v7  ;;  %v1549_v7 = vrot.slane %v1436_v2, 1 }
 0x22a   : > { %2544 = vmatprep.subr.bf16.mxu1 %v3348_v28  ;;  %v1557_v32 = vsel %vm415_vm1, %v1554_v44, %v1556_v52 }
 0x22b   : > { %3090 = vrot.lane.b32.xlu1 %v3089_v19, %s3402_s14 }
 0x22c   : > { %3085 = vrot.lane.b32.xlu0 %v3059_v35, %s3402_s14 }
 0x22d   : > { %2545 = vmatpush3.bf16.msra.mxu1 %v3348_v28 }
 0x22f   : > { %3100 = vrot.lane.b32.xlu1 %v3059_v35, %s3391_s17  ;;  %v4351_v35 = vld [vmem:[#allocation2 + $0x90] sm:$0xff] }
 0x230   : > { %3095 = vrot.lane.b32.xlu0 %v3069_v50, %s3403_s15  ;;  %v1495_v38 = vrot.slane %v4351_v35, 1  ;;  %v3209_v49 = vpack.i.bf16 %v4353_v61, %v4351_v35  ;;  %v1535_v12 = vrot.slane %v4351_v35, 2 }
 0x233   : > { %3110 = vrot.lane.b32.xlu1 %v3089_v19, %s3391_s17 }
 0x234   : > { %3105 = vrot.lane.b32.xlu0 %v3104_v55, %s3403_s15 }
 0x237   : > { %3120 = vrot.lane.b32.xlu1 %v3104_v55, %s3392_s19 }
 0x238   : > { %3115 = vrot.lane.b32.xlu0 %v3069_v50, %s3392_s19  ;;  %v1496_v50 = vrot.slane %v4353_v61, 1 }
 0x23a   : > { %v1499_v5 = vsel %vm364_vm0, %v1496_v50, %v1498_v57  ;;  %v1566_v57 = vrot.slane %v1438_v42, 2 }
 0x23b   : > { %3130 = vrot.lane.b32.xlu1 %v3129_v4, %s3394_s26 }
 0x23c   : > { %3125 = vrot.lane.b32.xlu0 %v3079_v58, %s3394_s26  ;;  %v1497_v58 = vsel %vm364_vm0, %v1495_v38, %v1496_v50  ;;  %v1564_v38 = vrot.slane %v1440_v23, 1  ;;  %v3319_v50 = vpack.i.bf16 %v1439_v10, %v1438_v42 }
 0x23d   : > { %v3219_v20 = vpack.i.bf16 %v1499_v5, %v1497_v58  ;;  %v1567_v58 = vrot.slane %v1439_v10, 2  ;;  %v1569_v5 = vrot.slane %v1440_v23, 2 }
 0x23f   : > { %3140 = vrot.lane.b32.xlu1 %v3139_v33, %s3396_s28 }
 0x240   : > { %3135 = vrot.lane.b32.xlu0 %v3089_v19, %s3396_s28  ;;  %v1536_v19 = vrot.slane %v4353_v61, 2 }
 0x242   : > { %v1537_v16 = vsel %vm415_vm1, %v1535_v12, %v1536_v19  ;;  %v1539_v11 = vsel %vm415_vm1, %v1536_v19, %v1538_v6  ;;  %v1565_v6 = vsel %vm364_vm0, %v1562_v51, %v1564_v38 }
 0x243   : > { %3150 = vrot.lane.b32.xlu1 %v3149_v53, %s3400_s18  ;;  %v3229_v47 = vpack.i.bf16 %v1539_v11, %v1537_v16  ;;  %v1568_v16 = vsel %vm415_vm1, %v1566_v57, %v1567_v58  ;;  %v1570_v11 = vsel %vm415_vm1, %v1567_v58, %v1569_v5 }
 0x244   : > { %3145 = vrot.lane.b32.xlu0 %v3104_v55, %s3400_s18  ;;  %v1434_v55 = vld [vmem:[#allocation2 + $0xb8] sm:$0x3]  ;;  %v3339_v31 = vpack.i.bf16 %v1570_v11, %v1568_v16 }
 0x245   : > { %v1503_v60 = vrot.slane %v1434_v55, 1  ;;  %v1543_v29 = vrot.slane %v1434_v55, 2 }
 0x247   : > { %3160 = vrot.lane.b32.xlu1 %v3159_v36, %s3401_s13  ;;  %v1544_v62 = vsel %vm415_vm1, %v1541_v3, %v1543_v29 }
 0x248   : > { %3155 = vrot.lane.b32.xlu0 %v3129_v4, %s3401_s13  ;;  %v1504_v4 = vsel %vm364_vm0, %v1501_v54, %v1503_v60  ;;  %v3264_v17 = vpack.i.bf16 %v1544_v62, %v1542_v63 }
 0x249   : > { %v3249_v22 = vpack.i.bf16 %v1504_v4, %v1502_v45 }
 0x24b   : > { %3170 = vrot.lane.b32.xlu1 %v3169_v43, %s3402_s14 }
 0x24c   : > { %3165 = vrot.lane.b32.xlu0 %v3139_v33, %s3402_s14 }
 0x24f   : > { %3180 = vrot.lane.b32.xlu1 %v3139_v33, %s3391_s17  ;;  %v1435_v33 = vld [vmem:[#allocation2 + $0xc0] sm:$0xff] }
 0x250   : > { %3175 = vrot.lane.b32.xlu0 %v3149_v53, %s3403_s15  ;;  %v1548_v25 = vrot.slane %v1435_v33, 1  ;;  %v3289_v0 = vpack.i.bf16 %v1436_v2, %v1435_v33 }
 0x252   : > { %v1550_v26 = vsel %vm364_vm0, %v1548_v25, %v1549_v7 }
 0x253   : > { %3190 = vrot.lane.b32.xlu1 %v3169_v43, %s3391_s17 }
 0x254   : > { %3185 = vrot.lane.b32.xlu0 %v3184_v40, %s3403_s15 }
 0x257   : > { %3200 = vrot.lane.b32.xlu1 %v3184_v40, %s3392_s19 }
 0x258   : > { %3195 = vrot.lane.b32.xlu0 %v3149_v53, %s3392_s19  ;;  %v1551_v53 = vrot.slane %v1437_v34, 1 }
 0x25a   : > { %v1552_v28 = vsel %vm364_vm0, %v1549_v7, %v1551_v53 }
 0x25b   : > { %3210 = vrot.lane.b32.xlu1 %v3209_v49, %s3394_s26  ;;  %v3299_v27 = vpack.i.bf16 %v1552_v28, %v1550_v26 }
 0x25c   : > { %3205 = vrot.lane.b32.xlu0 %v3159_v36, %s3394_s26  ;;  %v1553_v36 = vrot.slane %v1435_v33, 2 }
 0x25f   : > { %3220 = vrot.lane.b32.xlu1 %v3219_v20, %s3396_s28 }
 0x260   : > { %3215 = vrot.lane.b32.xlu0 %v3169_v43, %s3396_s28  ;;  %v1555_v43 = vsel %vm415_vm1, %v1553_v36, %v1554_v44  ;;  %vm2070_vm1 = vcmask 523264  }
 0x261   : > { %v3309_v56 = vpack.i.bf16 %v1557_v32, %v1555_v43 }
 0x263   : > { %3230 = vrot.lane.b32.xlu1 %v3229_v47, %s3400_s18 }
 0x264   : > { %3225 = vrot.lane.b32.xlu0 %v3184_v40, %s3400_s18  ;;  %v1561_v40 = vrot.slane %v1438_v42, 1 }
 0x267   : > { %3240 = vrot.lane.b32.xlu1 %v3239_v15, %s3401_s13 }
 0x268   : > { %3235 = vrot.lane.b32.xlu0 %v3209_v49, %s3401_s13  ;;  %v1563_v49 = vsel %vm364_vm0, %v1561_v40, %v1562_v51  ;;  %vm2053_vm0 = vcmask 457728  }
 0x26b   : > { %3250 = vrot.lane.b32.xlu1 %v3249_v22, %s3402_s14 }
 0x26c   : > { %3245 = vrot.lane.b32.xlu0 %v3219_v20, %s3402_s14 }
 0x26f   : > { %3260 = vrot.lane.b32.xlu1 %v3219_v20, %s3391_s17  ;;  %v3329_v20 = vpack.i.bf16 %v1565_v6, %v1563_v49 }
 0x270   : > { %3255 = vrot.lane.b32.xlu0 %v3229_v47, %s3403_s15 }
 0x273   : > { %3270 = vrot.lane.b32.xlu1 %v3249_v22, %s3391_s17 }
 0x274   : > { %3265 = vrot.lane.b32.xlu0 %v3264_v17, %s3403_s15 }
 0x277   : > { %3280 = vrot.lane.b32.xlu1 %v3264_v17, %s3392_s19 }
 0x278   : > { %3275 = vrot.lane.b32.xlu0 %v3229_v47, %s3392_s19 }
 0x27b   : > { %3290 = vrot.lane.b32.xlu1 %v3289_v0, %s3394_s26 }
 0x27c   : > { %3285 = vrot.lane.b32.xlu0 %v3239_v15, %s3394_s26 }
 0x27f   : > { %3300 = vrot.lane.b32.xlu1 %v3299_v27, %s3396_s28 }
 0x280   : > { %3295 = vrot.lane.b32.xlu0 %v3249_v22, %s3396_s28 }
 0x283   : > { %3310 = vrot.lane.b32.xlu1 %v3309_v56, %s3400_s18 }
 0x284   : > { %3305 = vrot.lane.b32.xlu0 %v3264_v17, %s3400_s18 }
 0x285   : > { %v3041_v12 = vpop.permute.xlu1 %3040 }
 0x286   : > { %v3026_v19 = vpop.permute.xlu0 %3025  ;;  %v3043_v62 = vunpack.i.h.bf16 %v3041_v12  ;;  %v3042_v17 = vunpack.i.l.bf16 %v3041_v12 }
 0x287   : > { %3320 = vrot.lane.b32.xlu1 %v3319_v50, %s3401_s13  ;;  %v3028_v4 = vunpack.i.h.bf16 %v3026_v19  ;;  %v3027_v22 = vunpack.i.l.bf16 %v3026_v19 }
 0x288   : > { %3315 = vrot.lane.b32.xlu0 %v3289_v0, %s3401_s13 }
 0x289   : > { %v3046_v55 = vpop.permute.xlu1 %3045  ;;  %v1956_v33 = vsel %vm993_vm4, %v4224_v59, %v3028_v4  ;;  %v1955_v2 = vsel %vm993_vm4, %v4222_v13, %v3027_v22 }
 0x28a   : > { %v3031_v47 = vpop.permute.xlu0 %3030  ;;  %v3048_v34 = vunpack.i.h.bf16 %v3046_v55  ;;  %v3047_v25 = vunpack.i.l.bf16 %v3046_v55  ;;  %v1971_v59 = vsel %vm1035_vm6, %v1955_v2, %v3042_v17  ;;  %v1972_v13 = vsel %vm1035_vm6, %v1956_v33, %v3043_v62 }
 0x28b   : > { %3330 = vrot.lane.b32.xlu1 %v3329_v20, %s3402_s14  ;;  %v3033_v3 = vunpack.i.h.bf16 %v3031_v47  ;;  %v3032_v29 = vunpack.i.l.bf16 %v3031_v47 }
 0x28c   : > { %3325 = vrot.lane.b32.xlu0 %v3299_v27, %s3402_s14 }
 0x28d   : > { %v3051_v54 = vpop.permute.xlu1 %3050  ;;  %v1958_v53 = vsel %vm993_vm4, %v4231_v14, %v3033_v3  ;;  %v1957_v0 = vsel %vm993_vm4, %v4229_v8, %v3032_v29 }
 0x28e   : > { %v3036_v60 = vpop.permute.xlu0 %3035  ;;  %v3053_v52 = vunpack.i.h.bf16 %v3051_v54  ;;  %v3052_v26 = vunpack.i.l.bf16 %v3051_v54  ;;  %v1973_v27 = vsel %vm1035_vm6, %v1957_v0, %v3047_v25  ;;  %v1974_v14 = vsel %vm1035_vm6, %v1958_v53, %v3048_v34 }
 0x28f   : > { %3340 = vrot.lane.b32.xlu1 %v3339_v31, %s3403_s15  ;;  %v3038_v36 = vunpack.i.h.bf16 %v3036_v60  ;;  %v3037_v44 = vunpack.i.l.bf16 %v3036_v60 }
 0x290   : > { %3335 = vrot.lane.b32.xlu0 %v3309_v56, %s3403_s15  ;;  %v1989_v42 = vsel %vm1077_vm8, %v1973_v27, %v3052_v26  ;;  %v1990_v10 = vsel %vm1077_vm8, %v1974_v14, %v3053_v52 }
 0x291   : > { %v4419_v15 = vpop.permute.xlu1 %3060  ;;  %v1987_v51 = vsel %vm1077_vm8, %v1971_v59, %v3037_v44  ;;  %v1988_v38 = vsel %vm1077_vm8, %v1972_v13, %v3038_v36 }
 0x292   : > { %v3056_v45 = vpop.permute.xlu0 %3055  ;;  %v3063_v49 = vunpack.i.h.bf16 %v4419_v15  ;;  %v3062_v6 = vunpack.i.l.bf16 %v4419_v15 }
 0x293   : > { %v3058_v43 = vunpack.i.h.bf16 %v3056_v45  ;;  %v3057_v32 = vunpack.i.l.bf16 %v3056_v45 }
 0x294   : > { %v2005_v62 = vsel %vm1119_vm10, %v1989_v42, %v3062_v6  ;;  %v2006_v17 = vsel %vm1119_vm10, %v1990_v10, %v3063_v49 }
 0x295   : > { %v4421_v30 = vpop.permute.xlu1 %3070  ;;  %v2003_v12 = vsel %vm1119_vm10, %v1987_v51, %v3057_v32  ;;  %v2004_v19 = vsel %vm1119_vm10, %v1988_v38, %v3058_v43 }
 0x296   : > { %v3066_v63 = vpop.permute.xlu0 %3065  ;;  %v3073_v20 = vunpack.i.h.bf16 %v4421_v30  ;;  %v3072_v16 = vunpack.i.l.bf16 %v4421_v30 }
 0x297   : > { %v3068_v23 = vunpack.i.h.bf16 %v3066_v63  ;;  %v3067_v56 = vunpack.i.l.bf16 %v3066_v63 }
 0x298   : > { %v2022_v25 = vsel %vm2019_vm14, %v2005_v62, %v3072_v16 }
 0x299   : > { %v4427_v7 = vpop.permute.xlu1 %3080  ;;  %v2020_v55 = vsel %vm2019_vm14, %v2003_v12, %v3067_v56  ;;  %v2021_v47 = vsel %vm2019_vm14, %v2004_v19, %v3068_v23 }
 0x29a   : > { %v3076_v28 = vpop.permute.xlu0 %3075  ;;  %v3083_v31 = vunpack.i.h.bf16 %v4427_v7  ;;  %v3082_v54 = vunpack.i.l.bf16 %v4427_v7  ;;  %v2023_v7 = vsel %vm2019_vm14, %v2006_v17, %v3073_v20 }
 0x29b   : > { %v3078_v50 = vunpack.i.h.bf16 %v3076_v28  ;;  %v3077_v57 = vunpack.i.l.bf16 %v3076_v28 }
 0x29c   : > { %v2039_v52 = vsel %vm2036_vm15, %v2022_v25, %v3082_v54  ;;  %v2040_v26 = vsel %vm2036_vm15, %v2023_v7, %v3083_v31 }
 0x29d   : > { %v3091_v8 = vpop.permute.xlu1 %3090  ;;  %v2037_v15 = vsel %vm2036_vm15, %v2020_v55, %v3077_v57  ;;  %v2038_v45 = vsel %vm2036_vm15, %v2021_v47, %v3078_v50 }
 0x29e   : > { %v3086_v40 = vpop.permute.xlu0 %3085  ;;  %v3093_v3 = vunpack.i.h.bf16 %v3091_v8  ;;  %v3092_v29 = vunpack.i.l.bf16 %v3091_v8 }
 0x29f   : > { %v3088_v58 = vunpack.i.h.bf16 %v3086_v40  ;;  %v3087_v5 = vunpack.i.l.bf16 %v3086_v40 }
 0x2a0   : > { %v2056_v44 = vsel %vm2053_vm0, %v2039_v52, %v3092_v29  ;;  %v2057_v59 = vsel %vm2053_vm0, %v2040_v26, %v3093_v3 }
 0x2a1   : > { %v3101_v11 = vpop.permute.xlu1 %3100  ;;  %v2054_v30 = vsel %vm2053_vm0, %v2037_v15, %v3087_v5  ;;  %v2055_v63 = vsel %vm2053_vm0, %v2038_v45, %v3088_v58 }
 0x2a2   : > { %v3096_v60 = vpop.permute.xlu0 %3095  ;;  %v3103_v50 = vunpack.i.h.bf16 %v3101_v11  ;;  %v3102_v57 = vunpack.i.l.bf16 %v3101_v11 }
 0x2a3   : > { %v3098_v4 = vunpack.i.h.bf16 %v3096_v60  ;;  %v3097_v22 = vunpack.i.l.bf16 %v3096_v60 }
 0x2a4   : > { %v1960_v60 = vsel %vm993_vm4, %v4244_v24, %v3103_v50  ;;  %v1959_v11 = vsel %vm993_vm4, %v4242_v1, %v3102_v57 }
 0x2a5   : > { %v3111_v33 = vpop.permute.xlu1 %3110  ;;  %v2071_v2 = vsel %vm2070_vm1, %v2054_v30, %v3097_v22  ;;  %v2072_v34 = vsel %vm2070_vm1, %v2055_v63, %v3098_v4 }
 0x2a6   : > { %v3106_v53 = vpop.permute.xlu0 %3105  ;;  %v2087_v0 = vpack.c.bf16 %v2072_v34, %v2071_v2  ;;  %v3113_v51 = vunpack.i.h.bf16 %v3111_v33  ;;  %v3112_v38 = vunpack.i.l.bf16 %v3111_v33 }
 0x2a7   : > { %v3108_v28 = vunpack.i.h.bf16 %v3106_v53  ;;  %v3107_v36 = vunpack.i.l.bf16 %v3106_v53 }
 0x2a8   : > { %2546 = vmatprep.mubr.msk.bf16.mxu1 %vm2138_vm2, %v2087_v0  ;;  %v1962_v55 = vsel %vm993_vm4, %v4270_v48, %v3113_v51  ;;  %v1961_v47 = vsel %vm993_vm4, %v4268_v41, %v3112_v38 }
 0x2a9   : > { %v2073_v13 = vsel %vm2070_vm1, %v2056_v44, %v3107_v36  ;;  %v2074_v27 = vsel %vm2070_vm1, %v2057_v59, %v3108_v28  ;;  %v3121_v14 = vpop.permute.xlu1 %3120 }
 0x2aa   : > { %v2088_v43 = vpack.c.bf16 %v2074_v27, %v2073_v13  ;;  %v3116_v32 = vpop.permute.xlu0 %3115  ;;  %v3123_v49 = vunpack.i.h.bf16 %v3121_v14  ;;  %v3122_v6 = vunpack.i.l.bf16 %v3121_v14 }
 0x2ab   : > { %v3118_v58 = vunpack.i.h.bf16 %v3116_v32  ;;  %v3117_v5 = vunpack.i.l.bf16 %v3116_v32 }
 0x2ac   : > { %2547 = vmatmul.mubr.msk.bf16.vlgmr.msra.gmra.mxu1 %vm2138_vm2, %v2088_v43  ;;  %v1977_v15 = vsel %vm1035_vm6, %v1961_v47, %v3122_v6  ;;  %v1978_v45 = vsel %vm1035_vm6, %v1962_v55, %v3123_v49 }
 0x2ad   : > { %v3131_v8 = vpop.permute.xlu1 %3130  ;;  %v1976_v4 = vsel %vm1035_vm6, %v1960_v60, %v3118_v58  ;;  %v1975_v22 = vsel %vm1035_vm6, %v1959_v11, %v3117_v5 }
 0x2ae   : > { %v3126_v42 = vpop.permute.xlu0 %3125  ;;  %v3133_v19 = vunpack.i.h.bf16 %v3131_v8  ;;  %v3132_v20 = vunpack.i.l.bf16 %v3131_v8 }
 0x2af   : > { %v3128_v31 = vunpack.i.h.bf16 %v3126_v42  ;;  %v3127_v54 = vunpack.i.l.bf16 %v3126_v42 }
 0x2b0   : > { %v1993_v41 = vsel %vm1077_vm8, %v1977_v15, %v3132_v20  ;;  %v1994_v30 = vsel %vm1077_vm8, %v1978_v45, %v3133_v19 }
 0x2b1   : > { %v4469_v10 = vpop.permute.xlu1 %3140  ;;  %v1991_v1 = vsel %vm1077_vm8, %v1975_v22, %v3127_v54  ;;  %v1992_v17 = vsel %vm1077_vm8, %v1976_v4, %v3128_v31 }
 0x2b2   : > { %v3136_v23 = vpop.permute.xlu0 %3135  ;;  %v3143_v34 = vunpack.i.h.bf16 %v4469_v10  ;;  %v3142_v25 = vunpack.i.l.bf16 %v4469_v10 }
 0x2b3   : > { %v3138_v48 = vunpack.i.h.bf16 %v3136_v23  ;;  %v3137_v3 = vunpack.i.l.bf16 %v3136_v23 }
 0x2b4   : > { %v2009_v51 = vsel %vm1119_vm10, %v1993_v41, %v3142_v25  ;;  %v2010_v38 = vsel %vm1119_vm10, %v1994_v30, %v3143_v34 }
 0x2b5   : > { %v4471_v56 = vpop.permute.xlu1 %3150  ;;  %v2007_v0 = vsel %vm1119_vm10, %v1991_v1, %v3137_v3  ;;  %v2008_v52 = vsel %vm1119_vm10, %v1992_v17, %v3138_v48 }
 0x2b6   : > { %v3146_v40 = vpop.permute.xlu0 %3145  ;;  %v3153_v26 = vunpack.i.h.bf16 %v4471_v56  ;;  %v3152_v28 = vunpack.i.l.bf16 %v4471_v56 }
 0x2b7   : > { %v3148_v63 = vunpack.i.h.bf16 %v3146_v40  ;;  %v3147_v24 = vunpack.i.l.bf16 %v3146_v40 }
 0x2b8   : > { %v2026_v6 = vsel %vm2019_vm14, %v2009_v51, %v3152_v28  ;;  %v2027_v58 = vsel %vm2019_vm14, %v2010_v38, %v3153_v26 }
 0x2b9   : > { %v3161_v12 = vpop.permute.xlu1 %3160  ;;  %v2024_v44 = vsel %vm2019_vm14, %v2007_v0, %v3147_v24  ;;  %v2025_v59 = vsel %vm2019_vm14, %v2008_v52, %v3148_v63 }
 0x2ba   : > { %v3156_v16 = vpop.permute.xlu0 %3155  ;;  %v3163_v13 = vunpack.i.h.bf16 %v3161_v12  ;;  %v3162_v27 = vunpack.i.l.bf16 %v3161_v12 }
 0x2bb   : > { %v3158_v33 = vunpack.i.h.bf16 %v3156_v16  ;;  %v3157_v2 = vunpack.i.l.bf16 %v3156_v16 }
 0x2bc   : > { %v2043_v19 = vsel %vm2036_vm15, %v2026_v6, %v3162_v27  ;;  %v2044_v20 = vsel %vm2036_vm15, %v2027_v58, %v3163_v13 }
 0x2bd   : > { %v3171_v29 = vpop.permute.xlu1 %3170  ;;  %v2041_v43 = vsel %vm2036_vm15, %v2024_v44, %v3157_v2  ;;  %v2042_v32 = vsel %vm2036_vm15, %v2025_v59, %v3158_v33 }
 0x2be   : > { %v3166_v62 = vpop.permute.xlu0 %3165  ;;  %v3173_v10 = vunpack.i.h.bf16 %v3171_v29  ;;  %v3172_v23 = vunpack.i.l.bf16 %v3171_v29 }
 0x2bf   : > { %v3168_v7 = vunpack.i.h.bf16 %v3166_v62  ;;  %v3167_v53 = vunpack.i.l.bf16 %v3166_v62 }
 0x2c0   : > { %v2060_v47 = vsel %vm2053_vm0, %v2043_v19, %v3172_v23  ;;  %v2061_v31 = vsel %vm2053_vm0, %v2044_v20, %v3173_v10 }
 0x2c1   : > { %v3181_v36 = vpop.permute.xlu1 %3180  ;;  %v2058_v40 = vsel %vm2053_vm0, %v2041_v43, %v3167_v53  ;;  %v2059_v56 = vsel %vm2053_vm0, %v2042_v32, %v3168_v7 }
 0x2c2   : > { %v3176_v14 = vpop.permute.xlu0 %3175  ;;  %v3183_v24 = vunpack.i.h.bf16 %v3181_v36  ;;  %v3182_v62 = vunpack.i.l.bf16 %v3181_v36 }
 0x2c3   : > { %v3178_v8 = vunpack.i.h.bf16 %v3176_v14  ;;  %v3177_v42 = vunpack.i.l.bf16 %v3176_v14 }
 0x2c4   : > { %v1964_v44 = vsel %vm993_vm4, %v4294_v46, %v3183_v24  ;;  %v1963_v36 = vsel %vm993_vm4, %v4292_v9, %v3182_v62 }
 0x2c5   : > { %v2075_v50 = vsel %vm2070_vm1, %v2058_v40, %v3177_v42  ;;  %v2076_v57 = vsel %vm2070_vm1, %v2059_v56, %v3178_v8  ;;  %v3191_v49 = vpop.permute.xlu1 %3190 }
 0x2c6   : > { %v2089_v5 = vpack.c.bf16 %v2076_v57, %v2075_v50  ;;  %v3186_v12 = vpop.permute.xlu0 %3185  ;;  %v3193_v30 = vunpack.i.h.bf16 %v3191_v49  ;;  %v3192_v63 = vunpack.i.l.bf16 %v3191_v49 }
 0x2c7   : > { %v3188_v16 = vunpack.i.h.bf16 %v3186_v12  ;;  %v3187_v55 = vunpack.i.l.bf16 %v3186_v12 }
 0x2c8   : > { %2550 = vmatprep.mubr.msk.bf16.mxu1 %vm2138_vm2, %v2089_v5  ;;  %v1966_v0 = vsel %vm993_vm4, %v4323_v18, %v3193_v30  ;;  %v1965_v52 = vsel %vm993_vm4, %v4321_v37, %v3192_v63 }
 0x2c9   : > { %v2078_v54 = vsel %vm2070_vm1, %v2061_v31, %v3188_v16  ;;  %v2077_v60 = vsel %vm2070_vm1, %v2060_v47, %v3187_v55  ;;  %v3201_v11 = vpop.permute.xlu1 %3200 }
 0x2ca   : > { %v2090_v15 = vpack.c.bf16 %v2078_v54, %v2077_v60  ;;  %v3196_v45 = vpop.permute.xlu0 %3195  ;;  %v3203_v1 = vunpack.i.h.bf16 %v3201_v11  ;;  %v3202_v17 = vunpack.i.l.bf16 %v3201_v11 }
 0x2cb   : > { %v3198_v33 = vunpack.i.h.bf16 %v3196_v45  ;;  %v3197_v2 = vunpack.i.l.bf16 %v3196_v45 }
 0x2cc   : > { %2551 = vmatmul.mubr.msk.bf16.gmra.mxu1 %vm2138_vm2, %v2090_v15  ;;  %v1981_v59 = vsel %vm1035_vm6, %v1965_v52, %v3202_v17  ;;  %v1982_v13 = vsel %vm1035_vm6, %v1966_v0, %v3203_v1 }
 0x2cd   : > { %v3211_v4 = vpop.permute.xlu1 %3210  ;;  %v1980_v27 = vsel %vm1035_vm6, %v1964_v44, %v3198_v33  ;;  %v1979_v14 = vsel %vm1035_vm6, %v1963_v36, %v3197_v2 }
 0x2ce   : > { %v3206_v22 = vpop.permute.xlu0 %3205  ;;  %v3213_v25 = vunpack.i.h.bf16 %v3211_v4  ;;  %v3212_v7 = vunpack.i.l.bf16 %v3211_v4 }
 0x2cf   : > { %v3208_v26 = vunpack.i.h.bf16 %v3206_v22  ;;  %v3207_v28 = vunpack.i.l.bf16 %v3206_v22 }
 0x2d0   : > { %v1997_v37 = vsel %vm1077_vm8, %v1981_v59, %v3212_v7  ;;  %v1998_v8 = vsel %vm1077_vm8, %v1982_v13, %v3213_v25 }
 0x2d1   : > { %v4515_v48 = vpop.permute.xlu1 %3220  ;;  %v1995_v9 = vsel %vm1077_vm8, %v1979_v14, %v3207_v28  ;;  %v1996_v23 = vsel %vm1077_vm8, %v1980_v27, %v3208_v26 }
 0x2d2   : > { %v3216_v3 = vpop.permute.xlu0 %3215  ;;  %v3223_v51 = vunpack.i.h.bf16 %v4515_v48  ;;  %v3222_v38 = vunpack.i.l.bf16 %v4515_v48 }
 0x2d3   : > { %v3218_v18 = vunpack.i.h.bf16 %v3216_v3  ;;  %v3217_v43 = vunpack.i.l.bf16 %v3216_v3 }
 0x2d4   : > { %v2013_v48 = vsel %vm1119_vm10, %v1997_v37, %v3222_v38  ;;  %v2014_v3 = vsel %vm1119_vm10, %v1998_v8, %v3223_v51 }
 0x2d5   : > { %v4517_v29 = vpop.permute.xlu1 %3230  ;;  %v2011_v49 = vsel %vm1119_vm10, %v1995_v9, %v3217_v43  ;;  %v2012_v6 = vsel %vm1119_vm10, %v1996_v23, %v3218_v18 }
 0x2d6   : > { %v3226_v41 = vpop.permute.xlu0 %3225  ;;  %v3233_v58 = vunpack.i.h.bf16 %v4517_v29  ;;  %v3232_v5 = vunpack.i.l.bf16 %v4517_v29 }
 0x2d7   : > { %v3228_v42 = vunpack.i.h.bf16 %v3226_v41  ;;  %v3227_v46 = vunpack.i.l.bf16 %v3226_v41 }
 0x2d8   : > { %v2030_v63 = vsel %vm2019_vm14, %v2013_v48, %v3232_v5  ;;  %v2031_v24 = vsel %vm2019_vm14, %v2014_v3, %v3233_v58 }
 0x2d9   : > { %v3241_v34 = vpop.permute.xlu1 %3240  ;;  %v2028_v19 = vsel %vm2019_vm14, %v2011_v49, %v3227_v46  ;;  %v2029_v20 = vsel %vm2019_vm14, %v2012_v6, %v3228_v42 }
 0x2da   : > { %v3236_v53 = vpop.permute.xlu0 %3235  ;;  %v3243_v16 = vunpack.i.h.bf16 %v3241_v34  ;;  %v3242_v55 = vunpack.i.l.bf16 %v3241_v34 }
 0x2db   : > { %v3238_v40 = vunpack.i.h.bf16 %v3236_v53  ;;  %v3237_v56 = vunpack.i.l.bf16 %v3236_v53 }
 0x2dc   : > { %v2047_v17 = vsel %vm2036_vm15, %v2030_v63, %v3242_v55  ;;  %v2048_v33 = vsel %vm2036_vm15, %v2031_v24, %v3243_v16 }
 0x2dd   : > { %v3251_v32 = vpop.permute.xlu1 %3250  ;;  %v2045_v31 = vsel %vm2036_vm15, %v2028_v19, %v3237_v56  ;;  %v2046_v54 = vsel %vm2036_vm15, %v2029_v20, %v3238_v40 }
 0x2de   : > { %v3246_v10 = vpop.permute.xlu0 %3245  ;;  %v3253_v15 = vunpack.i.h.bf16 %v3251_v32  ;;  %v3252_v45 = vunpack.i.l.bf16 %v3251_v32 }
 0x2df   : > { %v3248_v50 = vunpack.i.h.bf16 %v3246_v10  ;;  %v3247_v57 = vunpack.i.l.bf16 %v3246_v10 }
 0x2e0   : > { %v2064_v25 = vsel %vm2053_vm0, %v2047_v17, %v3252_v45  ;;  %v2065_v7 = vsel %vm2053_vm0, %v2048_v33, %v3253_v15 }
 0x2e1   : > { %v3261_v12 = vpop.permute.xlu1 %3260  ;;  %v2062_v4 = vsel %vm2053_vm0, %v2045_v31, %v3247_v57  ;;  %v2063_v22 = vsel %vm2053_vm0, %v2046_v54, %v3248_v50 }
 0x2e2   : > { %v3256_v47 = vpop.permute.xlu0 %3255  ;;  %v3263_v18 = vunpack.i.h.bf16 %v3261_v12  ;;  %v3262_v43 = vunpack.i.l.bf16 %v3261_v12 }
 0x2e3   : > { %v3258_v60 = vunpack.i.h.bf16 %v3256_v47  ;;  %v3257_v11 = vunpack.i.l.bf16 %v3256_v47 }
 0x2e4   : > { %v1968_v50 = vsel %vm993_vm4, %v4353_v61, %v3263_v18  ;;  %v1967_v57 = vsel %vm993_vm4, %v4351_v35, %v3262_v43 }
 0x2e5   : > { %v2079_v29 = vsel %vm2070_vm1, %v2062_v4, %v3257_v11  ;;  %v2080_v41 = vsel %vm2070_vm1, %v2063_v22, %v3258_v60  ;;  %v3271_v30 = vpop.permute.xlu1 %3270 }
 0x2e6   : > { %v2091_v62 = vpack.c.bf16 %v2080_v41, %v2079_v29  ;;  %v3266_v1 = vpop.permute.xlu0 %3265  ;;  %v3273_v27 = vunpack.i.h.bf16 %v3271_v30  ;;  %v3272_v14 = vunpack.i.l.bf16 %v3271_v30 }
 0x2e7   : > { %v3268_v2 = vunpack.i.h.bf16 %v3266_v1  ;;  %v3267_v34 = vunpack.i.l.bf16 %v3266_v1 }
 0x2e8   : > { %2554 = vmatprep.mubr.msk.bf16.mxu1 %vm2138_vm2, %v2091_v62  ;;  %v1970_v40 = vsel %vm993_vm4, %v4373_v21, %v3273_v27  ;;  %v1969_v56 = vsel %vm993_vm4, %v4371_v39, %v3272_v14 }
 0x2e9   : > { %v2082_v53 = vsel %vm2070_vm1, %v2065_v7, %v3268_v2  ;;  %v2081_v0 = vsel %vm2070_vm1, %v2064_v25, %v3267_v34  ;;  %v3281_v52 = vpop.permute.xlu1 %3280 }
 0x2ea   : > { %v2092_v26 = vpack.c.bf16 %v2082_v53, %v2081_v0  ;;  %v3276_v28 = vpop.permute.xlu0 %3275  ;;  %v3283_v32 = vunpack.i.h.bf16 %v3281_v52  ;;  %v3282_v37 = vunpack.i.l.bf16 %v3281_v52 }
 0x2eb   : > { %v3278_v42 = vunpack.i.h.bf16 %v3276_v28  ;;  %v3277_v46 = vunpack.i.l.bf16 %v3276_v28 }
 0x2ec   : > { %2555 = vmatmul.mubr.msk.bf16.gmra.mxu1 %vm2138_vm2, %v2092_v26  ;;  %v1985_v49 = vsel %vm1035_vm6, %v1969_v56, %v3282_v37  ;;  %v1986_v6 = vsel %vm1035_vm6, %v1970_v40, %v3283_v32 }
 0x2ed   : > { %v3291_v44 = vpop.permute.xlu1 %3290  ;;  %v1984_v5 = vsel %vm1035_vm6, %v1968_v50, %v3278_v42  ;;  %v1983_v21 = vsel %vm1035_vm6, %v1967_v57, %v3277_v46 }
 0x2ee   : > { %v3286_v36 = vpop.permute.xlu0 %3285  ;;  %v3293_v9 = vunpack.i.h.bf16 %v3291_v44  ;;  %v3292_v23 = vunpack.i.l.bf16 %v3291_v44 }
 0x2ef   : > { %v3288_v51 = vunpack.i.h.bf16 %v3286_v36  ;;  %v3287_v38 = vunpack.i.l.bf16 %v3286_v36 }
 0x2f0   : > { %v2001_v20 = vsel %vm1077_vm8, %v1985_v49, %v3292_v23  ;;  %v2002_v16 = vsel %vm1077_vm8, %v1986_v6, %v3293_v9  ;;  %v4602_v9 = vld [vmem:[%s4655_s4] ss:$0 sm:$0xff] }
 0x2f1   : > { %v3301_v59 = vpop.permute.xlu1 %3300  ;;  %v1999_v35 = vsel %vm1077_vm8, %v1983_v21, %v3287_v38  ;;  %v2000_v47 = vsel %vm1077_vm8, %v1984_v5, %v3288_v51 }
 0x2f2   : > { %v3296_v13 = vpop.permute.xlu0 %3295  ;;  %v3303_v12 = vunpack.i.h.bf16 %v3301_v59  ;;  %v3302_v19 = vunpack.i.l.bf16 %v3301_v59 }
 0x2f3   : > { %v3298_v61 = vunpack.i.h.bf16 %v3296_v13  ;;  %v3297_v55 = vunpack.i.l.bf16 %v3296_v13 }
 0x2f4   : > { %v2017_v22 = vsel %vm1119_vm10, %v2001_v20, %v3302_v19  ;;  %v2018_v48 = vsel %vm1119_vm10, %v2002_v16, %v3303_v12 }
 0x2f5   : > { %v3311_v8 = vpop.permute.xlu1 %3310  ;;  %v2015_v30 = vsel %vm1119_vm10, %v1999_v35, %v3297_v55  ;;  %v2016_v63 = vsel %vm1119_vm10, %v2000_v47, %v3298_v61 }
 0x2f6   : > { %v3306_v10 = vpop.permute.xlu0 %3305  ;;  %v3313_v31 = vunpack.i.h.bf16 %v3311_v8  ;;  %v3312_v54 = vunpack.i.l.bf16 %v3311_v8 }
 0x2f7   : > { %v3308_v60 = vunpack.i.h.bf16 %v3306_v10  ;;  %v3307_v11 = vunpack.i.l.bf16 %v3306_v10 }
 0x2f8   : > { %v2034_v1 = vsel %vm2019_vm14, %v2017_v22, %v3312_v54  ;;  %v2035_v17 = vsel %vm2019_vm14, %v2018_v48, %v3313_v31 }
 0x2f9   : > { %v3321_v58 = vpop.permute.xlu1 %3320  ;;  %v2032_v34 = vsel %vm2019_vm14, %v2015_v30, %v3307_v11  ;;  %v2033_v25 = vsel %vm2019_vm14, %v2016_v63, %v3308_v60 }
 0x2fa   : > { %v3316_v39 = vpop.permute.xlu0 %3315  ;;  %v3323_v15 = vunpack.i.h.bf16 %v3321_v58  ;;  %v3322_v45 = vunpack.i.l.bf16 %v3321_v58 }
 0x2fb   : > { %v3318_v3 = vunpack.i.h.bf16 %v3316_v39  ;;  %v3317_v29 = vunpack.i.l.bf16 %v3316_v39 }
 0x2fc   : > { %v2051_v7 = vsel %vm2036_vm15, %v2034_v1, %v3322_v45  ;;  %v2052_v53 = vsel %vm2036_vm15, %v2035_v17, %v3323_v15 }
 0x2fd   : > { %v3331_v4 = vpop.permute.xlu1 %3330  ;;  %v2049_v52 = vsel %vm2036_vm15, %v2032_v34, %v3317_v29  ;;  %v2050_v26 = vsel %vm2036_vm15, %v2033_v25, %v3318_v3 }
 0x2fe   : > { %v3326_v41 = vpop.permute.xlu0 %3325  ;;  %v3333_v24 = vunpack.i.h.bf16 %v3331_v4  ;;  %v3332_v62 = vunpack.i.l.bf16 %v3331_v4 }
 0x2ff   : > { %v3328_v33 = vunpack.i.h.bf16 %v3326_v41  ;;  %v3327_v2 = vunpack.i.l.bf16 %v3326_v41 }
 0x300   : > { %v2068_v59 = vsel %vm2053_vm0, %v2051_v7, %v3332_v62  ;;  %v2069_v13 = vsel %vm2053_vm0, %v2052_v53, %v3333_v24 }
 0x301   : > { %v3341_v0 = vpop.permute.xlu1 %3340  ;;  %v2066_v18 = vsel %vm2053_vm0, %v2049_v52, %v3327_v2  ;;  %v2067_v43 = vsel %vm2053_vm0, %v2050_v26, %v3328_v33 }
 0x302   : > { %v3343_v28 = vunpack.i.h.bf16 %v3341_v0  ;;  %v3342_v44 = vunpack.i.l.bf16 %v3341_v0  ;;  %v3336_v36 = vpop.permute.xlu0 %3335 }
 0x303   : > { %v3338_v27 = vunpack.i.h.bf16 %v3336_v36  ;;  %v3337_v14 = vunpack.i.l.bf16 %v3336_v36 }
 0x304   : > { %v2085_v32 = vsel %vm2070_vm1, %v2068_v59, %v3342_v44  ;;  %v2086_v37 = vsel %vm2070_vm1, %v2069_v13, %v3343_v28 }
 0x305   : > { %v2094_v8 = vpack.c.bf16 %v2086_v37, %v2085_v32  ;;  %v2083_v42 = vsel %vm2070_vm1, %v2066_v18, %v3337_v14  ;;  %v2084_v46 = vsel %vm2070_vm1, %v2067_v43, %v3338_v27 }
 0x306   : > { %v2093_v10 = vpack.c.bf16 %v2084_v46, %v2083_v42 }
 0x308   : > { %2558 = vmatprep.mubr.msk.bf16.mxu1 %vm2138_vm2, %v2093_v10 }
 0x309   : > { %2559 = vmatmul.mubr.msk.bf16.gmra.mxu1 %vm2138_vm2, %v2094_v8 }
 0x36c   : > { %v2548_v23 = vpop.f32.mrf.mxu1 }
 0x36d   : > { %v2210_v40 = vadd.f32 %v2548_v23, %v4602_v9 }
 0x36e   : > { %v2201_v56 = vpop.f32.mrf.mxu1 }
 0x36f   : > { %v2202_v51 = vadd.f32 %v4602_v9, %v2201_v56  ;;  %v2266_v50 = vmax.f32 %v2210_v40, 0.0 }
 0x370   : > { %v2549_v38 = vpop.f32.mrf.mxu1 }
 0x371   : > { %v2264_v57 = vmax.f32 %v2202_v51, 0.0  ;;  %v2213_v49 = vadd.f32 %v2549_v38, %v4602_v9 }
 0x372   : > { %v2204_v6 = vpop.f32.mrf.mxu1 }
 0x373   : > { %v2280_v58 = vmax.f32 %v2264_v57, %v2266_v50  ;;  %v2205_v5 = vadd.f32 %v4602_v9, %v2204_v6  ;;  %v2267_v21 = vmax.f32 %v2213_v49, 0.0 }
 0x375   : > { %2288 = vst.msk [vmem:[#allocation3] sm:$0xff] %vm993_vm4, %v2280_v58  ;;  %v2265_v12 = vmax.f32 %v2205_v5, 0.0 }
 0x377   : > { %v2281_v19 = vmax.f32 %v2265_v12, %v2267_v21 }
 0x379   : > { %2289 = vst.msk [vmem:[#allocation3 + $0x8] sm:$0xff] %vm993_vm4, %v2281_v19 }
 0x380   : > { %v2296_v39 = vld [vmem:[#allocation3] ss:$2 sm:$0xff]  ;;  %v2304_v20 = vld [vmem:[#allocation3 + $0x1] ss:$2 sm:$0xff] }
 0x381   : > { %v2311_v16 = vmax.f32 %v2296_v39, %v2304_v20 }
 0x383   : > { %2315 = vst.msk [vmem:[%s3471_s11] sm:$0xff] %vm993_vm4, %v2311_v16 }
 0x38c   : > { %v2552_v61 = vpop.f32.mrf.mxu1 }
 0x38d   : > { %v2226_v55 = vadd.f32 %v2552_v61, %v4602_v9 }
 0x38e   : > { %v2217_v35 = vpop.f32.mrf.mxu1 }
 0x38f   : > { %v2218_v47 = vadd.f32 %v4602_v9, %v2217_v35  ;;  %v2270_v54 = vmax.f32 %v2226_v55, 0.0 }
 0x390   : > { %v2553_v31 = vpop.f32.mrf.mxu1 }
 0x391   : > { %v2268_v60 = vmax.f32 %v2218_v47, 0.0  ;;  %v2229_v11 = vadd.f32 %v2553_v31, %v4602_v9 }
 0x392   : > { %v2220_v15 = vpop.f32.mrf.mxu1 }
 0x393   : > { %v2282_v45 = vmax.f32 %v2268_v60, %v2270_v54  ;;  %v2221_v4 = vadd.f32 %v4602_v9, %v2220_v15  ;;  %v2271_v22 = vmax.f32 %v2229_v11, 0.0 }
 0x395   : > { %2290 = vst.msk [vmem:[#allocation3 + $0x10] sm:$0xff] %vm993_vm4, %v2282_v45  ;;  %v2269_v48 = vmax.f32 %v2221_v4, 0.0 }
 0x397   : > { %v2283_v3 = vmax.f32 %v2269_v48, %v2271_v22 }
 0x399   : > { %2291 = vst.msk [vmem:[#allocation3 + $0x18] sm:$0xff] %vm993_vm4, %v2283_v3 }
 0x3a0   : > { %v2298_v29 = vld [vmem:[#allocation3 + $0x10] ss:$2 sm:$0xff]  ;;  %v2306_v41 = vld [vmem:[#allocation3 + $0x11] ss:$2 sm:$0xff] }
 0x3a1   : > { %v2312_v30 = vmax.f32 %v2298_v29, %v2306_v41 }
 0x3a3   : > { %2316 = vst.msk [vmem:[%s3471_s11 + $0x8] sm:$0xff] %vm993_vm4, %v2312_v30 }
 0x3ac   : > { %v2556_v63 = vpop.f32.mrf.mxu1 }
 0x3ad   : > { %v2242_v24 = vadd.f32 %v2556_v63, %v4602_v9 }
 0x3ae   : > { %v2233_v62 = vpop.f32.mrf.mxu1 }
 0x3af   : > { %v2234_v1 = vadd.f32 %v4602_v9, %v2233_v62  ;;  %v2274_v33 = vmax.f32 %v2242_v24, 0.0 }
 0x3b0   : > { %v2557_v17 = vpop.f32.mrf.mxu1 }
 0x3b1   : > { %v2272_v2 = vmax.f32 %v2234_v1, 0.0  ;;  %v2245_v34 = vadd.f32 %v2557_v17, %v4602_v9 }
 0x3b2   : > { %v2236_v25 = vpop.f32.mrf.mxu1 }
 0x3b3   : > { %v2284_v7 = vmax.f32 %v2272_v2, %v2274_v33  ;;  %v2237_v53 = vadd.f32 %v4602_v9, %v2236_v25  ;;  %v2275_v0 = vmax.f32 %v2245_v34, 0.0 }
 0x3b5   : > { %2292 = vst.msk [vmem:[#allocation3 + $0x20] sm:$0xff] %vm993_vm4, %v2284_v7  ;;  %v2273_v52 = vmax.f32 %v2237_v53, 0.0 }
 0x3b7   : > { %v2285_v26 = vmax.f32 %v2273_v52, %v2275_v0 }
 0x3b9   : > { %2293 = vst.msk [vmem:[#allocation3 + $0x28] sm:$0xff] %vm993_vm4, %v2285_v26 }
 0x3c0   : > { %v2300_v28 = vld [vmem:[#allocation3 + $0x20] ss:$2 sm:$0xff]  ;;  %v2308_v44 = vld [vmem:[#allocation3 + $0x21] ss:$2 sm:$0xff] }
 0x3c1   : > { %v2313_v36 = vmax.f32 %v2300_v28, %v2308_v44 }
 0x3c3   : > { %2317 = vst.msk [vmem:[%s3471_s11 + $0x10] sm:$0xff] %vm993_vm4, %v2313_v36 }
 0x3c9   : > { %v2560_v59 = vpop.f32.mrf.mxu1 }
 0x3ca   : > { %v2258_v13 = vadd.f32 %v2560_v59, %v4602_v9 }
 0x3cb   : > { %v2249_v27 = vpop.f32.mrf.mxu1 }
 0x3cc   : > { %v2250_v14 = vadd.f32 %v4602_v9, %v2249_v27  ;;  %v2278_v43 = vmax.f32 %v2258_v13, 0.0 }
 0x3cd   : > { %v2561_v18 = vpop.f32.mrf.mxu1 }
 0x3ce   : > { %v2276_v32 = vmax.f32 %v2250_v14, 0.0  ;;  %v2261_v37 = vadd.f32 %v2561_v18, %v4602_v9 }
 0x3cf   : > { %v2252_v8 = vpop.f32.mrf.mxu1 }
 0x3d0   : > { %v2286_v42 = vmax.f32 %v2276_v32, %v2278_v43  ;;  %v2253_v46 = vadd.f32 %v4602_v9, %v2252_v8  ;;  %v2279_v10 = vmax.f32 %v2261_v37, 0.0 }
 0x3d2   : > { %2294 = vst.msk [vmem:[#allocation3 + $0x30] sm:$0xff] %vm993_vm4, %v2286_v42  ;;  %v2277_v23 = vmax.f32 %v2253_v46, 0.0 }
 0x3d4   : > { %v2287_v40 = vmax.f32 %v2277_v23, %v2279_v10 }
 0x3d6   : > { %2295 = vst.msk [vmem:[#allocation3 + $0x38] sm:$0xff] %vm993_vm4, %v2287_v40 }
 0x3dd   : > { %v2302_v56 = vld [vmem:[#allocation3 + $0x30] ss:$2 sm:$0xff]  ;;  %v2310_v51 = vld [vmem:[#allocation3 + $0x31] ss:$2 sm:$0xff] }
 0x3de   : > { %v2314_v38 = vmax.f32 %v2302_v56, %v2310_v51 }
 0x3e0   : > { %2318 = vst.msk [vmem:[%s3471_s11 + $0x18] sm:$0xff] %vm993_vm4, %v2314_v38 }
 0x3e1 PF: > { %s15_s22 = sadd.s32 1, %s3387_s22   ;;  %s4657_s18 = smov %s3379_s20 }
 0x3e2   : > { %p12_p9 = scmp.ge.s32.totalorder %s15_s22, 6   ;;  %s4658_s19 = smov %s3383_s21 }
 0x3e3   : > { %s4659_s20 = smov %s4662_s23  ;;  %s4660_s21 = smov %s4666_s24 }
 0x3e4   :  { %14 = sbr.rel (!%p12_p9) target bundleno = 3 (0x3), region = 86 }

</bundles_post_ra>
